<compile_context>
chip_gen: v7x
topology: tpu7x:2x2x1
jax: 0.10.0
libtpu: 0.0.40
codegen_flags: <defaults>
</compile_context>

<pallas_src>
import functools

import jax
import jax.numpy as jnp
from jax.experimental import pallas as pl
from jax.experimental.pallas import tpu as pltpu

# ---------------- small synthetic T5 config ----------------
VOCAB = 64
D_MODEL = 32
N_HEADS = 4
D_KV = 8                      # N_HEADS * D_KV == D_MODEL (inner dim)
INNER = N_HEADS * D_KV        # 32
D_FF = 64
N_LAYERS = 2
REL_BUCKETS = 8
REL_MAX_DIST = 16
EPS = 1e-6
NEG_INF = -1e9                # dtype-safe additive mask value

D_PAD = 128                   # lane-dense hidden width (real columns: D_MODEL, rest zero)
QKV_PAD = 128                 # fused q|k|v 3*INNER = 96 -> 128
FF_PAD = 128                  # D_FF 64 -> 128


def _rms(x):
    # T5 LayerNorm: no mean subtraction, no bias.  Pad columns of x are exactly zero,
    # so summing over the padded 128 lanes and dividing by the real D_MODEL is exact.
    var = jnp.sum(x * x, axis=-1, keepdims=True) * (1.0 / D_MODEL)
    return x * jax.lax.rsqrt(var + EPS)


# ---------------- fused encoder-stack kernel (one batch row per grid step) ----------------
def _encoder_kernel(h0_ref, bias_ref, mask_ref,
                    ln0_ref, wqkv_ref, wo_ref, ln1_ref, wi_ref, wff_ref,
                    fln_ref, out_ref, *, seq, n_heads, d_kv, n_layers):
    inner = n_heads * d_kv
    hidden = h0_ref[0]                    # [S, D_PAD] f32 (pad cols zero)
    mask_add = mask_ref[...]              # [1, 1, S] additive padding mask
    bias = bias_ref[...]                  # [H, S, S] relative-position bias

    for l in range(n_layers):             # N_LAYERS=2: stays unrolled (see TODO above)
        # --- self-attention sub-layer ---
        x = (_rms(hidden) * ln0_ref[l]).astype(jnp.bfloat16)
        qkv = jnp.dot(x, wqkv_ref[l], preferred_element_type=jnp.float32)   # [S, 128]
        q = qkv[:, :inner].reshape(seq, n_heads, d_kv).astype(jnp.bfloat16)
        k = qkv[:, inner:2 * inner].reshape(seq, n_heads, d_kv).astype(jnp.bfloat16)
        v = qkv[:, 2 * inner:3 * inner].reshape(seq, n_heads, d_kv).astype(jnp.bfloat16)
        # T5 does NOT scale QK^T; all heads in one batched einsum.
        s = jnp.einsum('qhd,khd->hqk', q, k, preferred_element_type=jnp.float32)
        s = s + bias + mask_add                                              # [H, S, S]
        m = jnp.max(s, axis=-1, keepdims=True)
        p = jnp.exp(s - m)
        p = p * pl.reciprocal(jnp.sum(p, axis=-1, keepdims=True), approx=True)
        o = jnp.einsum('hqk,khd->qhd', p.astype(jnp.bfloat16), v,
                       preferred_element_type=jnp.float32)
        o = o.reshape(seq, inner).astype(jnp.bfloat16)                       # [S, 32]
        # output projection (lane-dense 128-wide output) + residual (dropout = identity)
        hidden = hidden + jnp.dot(o, wo_ref[l], preferred_element_type=jnp.float32)

        # --- feed-forward sub-layer (ReLU, T5 default) ---
        x = (_rms(hidden) * ln1_ref[l]).astype(jnp.bfloat16)
        hff = jnp.maximum(jnp.dot(x, wi_ref[l], preferred_element_type=jnp.float32), 0.0)
        hidden = hidden + jnp.dot(hff.astype(jnp.bfloat16), wff_ref[l],
                                  preferred_element_type=jnp.float32)

    out_ref[0] = _rms(hidden) * fln_ref[...]


# ---------------- plain-JAX glue ----------------
def relative_position_bucket(rel_pos, num_buckets=REL_BUCKETS, max_distance=REL_MAX_DIST):
    # Bidirectional bucketing, matching HF T5Attention._relative_position_bucket.
    num_buckets = num_buckets // 2
    ret = (rel_pos > 0).astype(jnp.int32) * num_buckets
    n = jnp.abs(rel_pos)
    max_exact = num_buckets // 2
    is_small = n < max_exact
    n_safe = jnp.maximum(n, 1)     # guard log(0): both jnp.where branches are evaluated
    val_if_large = max_exact + (
        jnp.log(n_safe.astype(jnp.float32) / max_exact)
        / jnp.log(max_distance / max_exact)
        * (num_buckets - max_exact)
    ).astype(jnp.int32)
    val_if_large = jnp.minimum(val_if_large, num_buckets - 1)
    ret = ret + jnp.where(is_small, n, val_if_large)
    return ret


def init_params(key):
    def normal(k, shape, scale=0.02):
        return jax.random.normal(k, shape, jnp.float32) * scale

    keys = jax.random.split(key, 2 + 6 * N_LAYERS)
    wqkv, wo, wi, wff = [], [], [], []
    for l in range(N_LAYERS):
        k = keys[2 + 6 * l: 2 + 6 * (l + 1)]
        wq = normal(k[0], (D_MODEL, INNER))
        wk = normal(k[1], (D_MODEL, INNER))
        wv = normal(k[2], (D_MODEL, INNER))
        qkv = jnp.concatenate([wq, wk, wv], axis=1)                           # [32, 96]
        wqkv.append(jnp.pad(qkv, ((0, D_PAD - D_MODEL),
                                  (0, QKV_PAD - 3 * INNER))))                 # [128, 128]
        wo.append(jnp.pad(normal(k[3], (INNER, D_MODEL)),
                          ((0, 0), (0, D_PAD - D_MODEL))))                    # [32, 128]
        wi.append(jnp.pad(normal(k[4], (D_MODEL, D_FF)),
                          ((0, D_PAD - D_MODEL), (0, FF_PAD - D_FF))))        # [128, 128]
        wff.append(jnp.pad(normal(k[5], (D_FF, D_MODEL)),
                           ((0, FF_PAD - D_FF), (0, D_PAD - D_MODEL))))       # [128, 128]
    embed = jnp.pad(normal(keys[0], (VOCAB, D_MODEL)), ((0, 0), (0, D_PAD - D_MODEL)))
    return {
        "embed": embed,                                          # [VOCAB, 128] f32
        "rel_bias": normal(keys[1], (REL_BUCKETS, N_HEADS)),
        "ln0": jnp.ones((N_LAYERS, 1, D_PAD), jnp.float32),
        "ln1": jnp.ones((N_LAYERS, 1, D_PAD), jnp.float32),
        "final_ln": jnp.ones((1, D_PAD), jnp.float32),
        "wqkv": jnp.stack(wqkv).astype(jnp.bfloat16),            # [L, 128, 128]
        "wo": jnp.stack(wo).astype(jnp.bfloat16),                # [L,  32, 128]
        "wi": jnp.stack(wi).astype(jnp.bfloat16),                # [L, 128, 128]
        "wff": jnp.stack(wff).astype(jnp.bfloat16),              # [L, 128, 128]
    }


@jax.jit
def t5_fewshot_forward(params, input_ids, attention_mask):
    """Equivalent of T5ForFewshotGeneration.forward(input_ids, attention_mask)
    -> encoder last hidden state [B, S, D_MODEL] (f32)."""
    B, S = input_ids.shape
    H, L = N_HEADS, N_LAYERS

    # Shared embedding lookup (no scaling in T5); tiny gather kept in XLA.
    hidden0 = params["embed"][input_ids]                                  # [B, S, 128]

    # Additive padding mask [B, 1, S] (broadcast-added inside the kernel).
    mask_add = ((1.0 - attention_mask.astype(jnp.float32)) * NEG_INF).reshape(B, 1, S)

    # Relative position bias [H, S, S] (computed once, shared by all layers).
    ctx = jnp.arange(S)[:, None]
    mem = jnp.arange(S)[None, :]
    buckets = relative_position_bucket(mem - ctx)                         # [S, S]
    pos_bias = jnp.transpose(params["rel_bias"][buckets], (2, 0, 1))      # [H, S, S]

    kernel = functools.partial(_encoder_kernel, seq=S, n_heads=N_HEADS,
                               d_kv=D_KV, n_layers=N_LAYERS)

    def rep(shape):
        # Grid-invariant (fully resident) block: same block index for every grid step.
        nd = len(shape)
        return pl.BlockSpec(shape, lambda b, _nd=nd: (0,) * _nd)

    # Advisory cost estimate (per-forward FLOPs / transcendentals / bytes).
    flops = 2 * B * L * (S * D_PAD * QKV_PAD           # fused qkv proj
                         + 2 * H * S * S * D_KV        # scores + p@v
                         + S * INNER * D_PAD           # output proj
                         + 2 * S * D_PAD * FF_PAD)     # FFN in + out
    transcendentals = B * (L * (H * S * S + 2 * S) + S)
    bytes_accessed = (2 * B * S * D_PAD * 4            # hidden0 + output
                      + H * S * S * 4 + B * S * 4      # bias + mask
                      + (2 * L + 1) * D_PAD * 4        # ln weights
                      + L * (3 * D_PAD * 128 + INNER * D_PAD) * 2)   # bf16 weights

    out = pl.pallas_call(
        kernel,
        out_shape=jax.ShapeDtypeStruct((B, S, D_PAD), jnp.float32),
        grid=(B,),
        in_specs=[
            pl.BlockSpec((1, S, D_PAD), lambda b: (b, 0, 0)),   # hidden0 (per batch)
            rep((H, S, S)),                                     # pos bias
            pl.BlockSpec((1, 1, S), lambda b: (b, 0, 0)),       # mask (per batch)
            rep((L, 1, D_PAD)),                                 # ln0
            rep((L, D_PAD, QKV_PAD)),                           # wqkv
            rep((L, INNER, D_PAD)),                             # wo
            rep((L, 1, D_PAD)),                                 # ln1
            rep((L, D_PAD, FF_PAD)),                            # wi
            rep((L, FF_PAD, D_PAD)),                            # wff
            rep((1, D_PAD)),                                    # final ln
        ],
        out_specs=pl.BlockSpec((1, S, D_PAD), lambda b: (b, 0, 0)),
        compiler_params=pltpu.CompilerParams(dimension_semantics=("parallel",)),
        cost_estimate=pl.CostEstimate(flops=flops, transcendentals=transcendentals,
                                      bytes_accessed=bytes_accessed),
    )(hidden0, pos_bias, mask_add,
      params["ln0"], params["wqkv"], params["wo"],
      params["ln1"], params["wi"], params["wff"],
      params["final_ln"])
    return out[:, :, :D_MODEL]


if __name__ == "__main__":
    key = jax.random.PRNGKey(0)
    pkey, ikey = jax.random.split(key)
    params = init_params(pkey)

    B, S = 2, 8
    input_ids = jax.random.randint(ikey, (B, S), 0, VOCAB, dtype=jnp.int32)
    attention_mask = jnp.ones((B, S), dtype=jnp.int32)
    attention_mask = attention_mask.at[1, 6:].set(0)  # exercise padding mask

    out = t5_fewshot_forward(params, input_ids, attention_mask)
    jax.block_until_ready(out)
    assert out.shape == (B, S, D_MODEL)
    print("KERNEL_OK")
</pallas_src>

<mosaic_0001>
module attributes {stable_mosaic.version = 11 : i64} {
  func.func @_encoder_kernel(%arg0: i32, %arg1: memref<1x8x128xf32, #tpu.memory_space<vmem>>, %arg2: memref<4x8x8xf32, #tpu.memory_space<vmem>>, %arg3: memref<1x1x8xf32, #tpu.memory_space<vmem>>, %arg4: memref<2x1x128xf32, #tpu.memory_space<vmem>>, %arg5: memref<2x128x128xbf16, #tpu.memory_space<vmem>>, %arg6: memref<2x32x128xbf16, #tpu.memory_space<vmem>>, %arg7: memref<2x1x128xf32, #tpu.memory_space<vmem>>, %arg8: memref<2x128x128xbf16, #tpu.memory_space<vmem>>, %arg9: memref<2x128x128xbf16, #tpu.memory_space<vmem>>, %arg10: memref<1x128xf32, #tpu.memory_space<vmem>>, %arg11: memref<1x8x128xf32, #tpu.memory_space<vmem>>) attributes {dimension_semantics = [#tpu.dimension_semantics<parallel>], iteration_bounds = array<i64: 2>, scalar_prefetch = 0 : i64, scratch_operands = 0 : i64, tpu.core_type = #tpu.core_type<tc>, window_params = [{transform_indices = @transform_0, window_bounds = array<i64: 1, 8, 128>}, {pipeline_mode = #tpu.pipeline_mode<synchronous>, transform_indices = @transform_1, window_bounds = array<i64: 4, 8, 8>}, {transform_indices = @transform_2, window_bounds = array<i64: 1, 1, 8>}, {pipeline_mode = #tpu.pipeline_mode<synchronous>, transform_indices = @transform_3, window_bounds = array<i64: 2, 1, 128>}, {pipeline_mode = #tpu.pipeline_mode<synchronous>, transform_indices = @transform_4, window_bounds = array<i64: 2, 128, 128>}, {pipeline_mode = #tpu.pipeline_mode<synchronous>, transform_indices = @transform_5, window_bounds = array<i64: 2, 32, 128>}, {pipeline_mode = #tpu.pipeline_mode<synchronous>, transform_indices = @transform_6, window_bounds = array<i64: 2, 1, 128>}, {pipeline_mode = #tpu.pipeline_mode<synchronous>, transform_indices = @transform_7, window_bounds = array<i64: 2, 128, 128>}, {pipeline_mode = #tpu.pipeline_mode<synchronous>, transform_indices = @transform_8, window_bounds = array<i64: 2, 128, 128>}, {pipeline_mode = #tpu.pipeline_mode<synchronous>, transform_indices = @transform_9, window_bounds = array<i64: 1, 128>}, {transform_indices = @transform_10, window_bounds = array<i64: 1, 8, 128>}]} {
    %c0 = arith.constant 0 : index
    %c0_0 = arith.constant 0 : index
    %c0_1 = arith.constant 0 : index
    %0 = vector.load %arg1[%c0, %c0_0, %c0_1] : memref<1x8x128xf32, #tpu.memory_space<vmem>>, vector<1x8x128xf32>
    %1 = vector.shape_cast %0 : vector<1x8x128xf32> to vector<8x128xf32>
    %c0_2 = arith.constant 0 : index
    %c0_3 = arith.constant 0 : index
    %c0_4 = arith.constant 0 : index
    %2 = vector.load %arg3[%c0_2, %c0_3, %c0_4] : memref<1x1x8xf32, #tpu.memory_space<vmem>>, vector<1x1x8xf32>
    %c0_5 = arith.constant 0 : index
    %c0_6 = arith.constant 0 : index
    %c0_7 = arith.constant 0 : index
    %3 = vector.load %arg2[%c0_5, %c0_6, %c0_7] : memref<4x8x8xf32, #tpu.memory_space<vmem>>, vector<4x8x8xf32>
    %4 = arith.mulf %1, %1 : vector<8x128xf32>
    %cst = arith.constant dense<0.000000e+00> : vector<8xf32>
    %5 = vector.multi_reduction <add>, %4, %cst [1] : vector<8x128xf32> to vector<8xf32>
    %6 = vector.shape_cast %5 : vector<8xf32> to vector<8x1xf32>
    %cst_8 = arith.constant 3.125000e-02 : f32
    %7 = vector.broadcast %cst_8 : f32 to vector<8x1xf32>
    %8 = arith.mulf %6, %7 : vector<8x1xf32>
    %cst_9 = arith.constant 9.99999997E-7 : f32
    %9 = vector.broadcast %cst_9 : f32 to vector<8x1xf32>
    %10 = arith.addf %8, %9 : vector<8x1xf32>
    %11 = math.rsqrt %10 : vector<8x1xf32>
    %12 = vector.broadcast %11 : vector<8x1xf32> to vector<8x128xf32>
    %13 = arith.mulf %1, %12 : vector<8x128xf32>
    %c0_10 = arith.constant 0 : index
    %c0_11 = arith.constant 0 : index
    %c0_12 = arith.constant 0 : index
    %14 = vector.load %arg4[%c0_10, %c0_11, %c0_12] : memref<2x1x128xf32, #tpu.memory_space<vmem>>, vector<1x1x128xf32>
    %15 = vector.shape_cast %14 : vector<1x1x128xf32> to vector<1x128xf32>
    %16 = vector.broadcast %15 : vector<1x128xf32> to vector<8x128xf32>
    %17 = arith.mulf %13, %16 : vector<8x128xf32>
    %18 = arith.truncf %17 : vector<8x128xf32> to vector<8x128xbf16>
    %c0_13 = arith.constant 0 : index
    %c0_14 = arith.constant 0 : index
    %c0_15 = arith.constant 0 : index
    %19 = vector.load %arg5[%c0_13, %c0_14, %c0_15] : memref<2x128x128xbf16, #tpu.memory_space<vmem>>, vector<1x128x128xbf16>
    %20 = vector.shape_cast %19 : vector<1x128x128xbf16> to vector<128x128xbf16>
    %cst_16 = arith.constant dense<0.000000e+00> : vector<8x128xf32>
    %21 = tpu.matmul %18, %20, %cst_16 {dimension_numbers = #tpu.dot_dimension_numbers<[1], [0], [0], [1], [0, 0, 1, 1], [], []>} : vector<8x128xbf16>, vector<128x128xbf16>, vector<8x128xf32> -> vector<8x128xf32>
    %22 = vector.extract_strided_slice %21 {offsets = [0, 0], sizes = [8, 32], strides = [1, 1]} : vector<8x128xf32> to vector<8x32xf32>
    %23 = vector.shape_cast %22 : vector<8x32xf32> to vector<8x4x8xf32>
    %24 = arith.truncf %23 : vector<8x4x8xf32> to vector<8x4x8xbf16>
    %25 = vector.extract_strided_slice %21 {offsets = [0, 32], sizes = [8, 32], strides = [1, 1]} : vector<8x128xf32> to vector<8x32xf32>
    %26 = vector.shape_cast %25 : vector<8x32xf32> to vector<8x4x8xf32>
    %27 = arith.truncf %26 : vector<8x4x8xf32> to vector<8x4x8xbf16>
    %28 = vector.extract_strided_slice %21 {offsets = [0, 64], sizes = [8, 32], strides = [1, 1]} : vector<8x128xf32> to vector<8x32xf32>
    %29 = vector.shape_cast %28 : vector<8x32xf32> to vector<8x4x8xf32>
    %30 = arith.truncf %29 : vector<8x4x8xf32> to vector<8x4x8xbf16>
    "tpu.trace_start"() <{level = 10 : i32, message = "qhd,khd->hqk"}> : () -> ()
    %cst_17 = arith.constant dense<0.000000e+00> : vector<4x8x8xf32>
    %31 = tpu.matmul %24, %27, %cst_17 {dimension_numbers = #tpu.dot_dimension_numbers<[2], [2], [0], [0], [0, 1, 0, 0, 1, 0], [1], [1]>} : vector<8x4x8xbf16>, vector<8x4x8xbf16>, vector<4x8x8xf32> -> vector<4x8x8xf32>
    "tpu.trace_stop"() : () -> ()
    %32 = arith.addf %31, %3 : vector<4x8x8xf32>
    %33 = vector.broadcast %2 : vector<1x1x8xf32> to vector<4x8x8xf32>
    %34 = arith.addf %32, %33 : vector<4x8x8xf32>
    %cst_18 = arith.constant dense<0xFF800000> : vector<4x8xf32>
    %35 = vector.multi_reduction <maximumf>, %34, %cst_18 [2] : vector<4x8x8xf32> to vector<4x8xf32>
    %36 = vector.shape_cast %35 : vector<4x8xf32> to vector<4x8x1xf32>
    %37 = vector.broadcast %36 : vector<4x8x1xf32> to vector<4x8x8xf32>
    %38 = arith.subf %34, %37 : vector<4x8x8xf32>
    %39 = math.exp %38 : vector<4x8x8xf32>
    %cst_19 = arith.constant dense<0.000000e+00> : vector<4x8xf32>
    %40 = vector.multi_reduction <add>, %39, %cst_19 [2] : vector<4x8x8xf32> to vector<4x8xf32>
    %41 = vector.shape_cast %40 : vector<4x8xf32> to vector<4x8x1xf32>
    %42 = tpu.reciprocal %41 {approx = true} : vector<4x8x1xf32> -> vector<4x8x1xf32>
    %43 = vector.broadcast %42 : vector<4x8x1xf32> to vector<4x8x8xf32>
    %44 = arith.mulf %39, %43 : vector<4x8x8xf32>
    %45 = arith.truncf %44 : vector<4x8x8xf32> to vector<4x8x8xbf16>
    "tpu.trace_start"() <{level = 10 : i32, message = "hqk,khd->qhd"}> : () -> ()
    %cst_20 = arith.constant dense<0.000000e+00> : vector<4x8x8xf32>
    %46 = tpu.matmul %30, %45, %cst_20 {dimension_numbers = #tpu.dot_dimension_numbers<[0], [2], [2], [1], [0, 1, 0, 2, 1, 1], [1], [0]>} : vector<8x4x8xbf16>, vector<4x8x8xbf16>, vector<4x8x8xf32> -> vector<4x8x8xf32>
    %47 = tpu.transpose %46, [2, 0, 1] : vector<4x8x8xf32> -> vector<8x4x8xf32>
    "tpu.trace_stop"() : () -> ()
    %48 = vector.shape_cast %47 : vector<8x4x8xf32> to vector<8x32xf32>
    %49 = arith.truncf %48 : vector<8x32xf32> to vector<8x32xbf16>
    %c0_21 = arith.constant 0 : index
    %c0_22 = arith.constant 0 : index
    %c0_23 = arith.constant 0 : index
    %50 = vector.load %arg6[%c0_21, %c0_22, %c0_23] : memref<2x32x128xbf16, #tpu.memory_space<vmem>>, vector<1x32x128xbf16>
    %51 = vector.shape_cast %50 : vector<1x32x128xbf16> to vector<32x128xbf16>
    %cst_24 = arith.constant dense<0.000000e+00> : vector<8x128xf32>
    %52 = tpu.matmul %49, %51, %cst_24 {dimension_numbers = #tpu.dot_dimension_numbers<[1], [0], [0], [1], [0, 0, 1, 1], [], []>} : vector<8x32xbf16>, vector<32x128xbf16>, vector<8x128xf32> -> vector<8x128xf32>
    %53 = arith.addf %1, %52 : vector<8x128xf32>
    %54 = arith.mulf %53, %53 : vector<8x128xf32>
    %cst_25 = arith.constant dense<0.000000e+00> : vector<8xf32>
    %55 = vector.multi_reduction <add>, %54, %cst_25 [1] : vector<8x128xf32> to vector<8xf32>
    %56 = vector.shape_cast %55 : vector<8xf32> to vector<8x1xf32>
    %cst_26 = arith.constant 3.125000e-02 : f32
    %57 = vector.broadcast %cst_26 : f32 to vector<8x1xf32>
    %58 = arith.mulf %56, %57 : vector<8x1xf32>
    %cst_27 = arith.constant 9.99999997E-7 : f32
    %59 = vector.broadcast %cst_27 : f32 to vector<8x1xf32>
    %60 = arith.addf %58, %59 : vector<8x1xf32>
    %61 = math.rsqrt %60 : vector<8x1xf32>
    %62 = vector.broadcast %61 : vector<8x1xf32> to vector<8x128xf32>
    %63 = arith.mulf %53, %62 : vector<8x128xf32>
    %c0_28 = arith.constant 0 : index
    %c0_29 = arith.constant 0 : index
    %c0_30 = arith.constant 0 : index
    %64 = vector.load %arg7[%c0_28, %c0_29, %c0_30] : memref<2x1x128xf32, #tpu.memory_space<vmem>>, vector<1x1x128xf32>
    %65 = vector.shape_cast %64 : vector<1x1x128xf32> to vector<1x128xf32>
    %66 = vector.broadcast %65 : vector<1x128xf32> to vector<8x128xf32>
    %67 = arith.mulf %63, %66 : vector<8x128xf32>
    %68 = arith.truncf %67 : vector<8x128xf32> to vector<8x128xbf16>
    %c0_31 = arith.constant 0 : index
    %c0_32 = arith.constant 0 : index
    %c0_33 = arith.constant 0 : index
    %69 = vector.load %arg8[%c0_31, %c0_32, %c0_33] : memref<2x128x128xbf16, #tpu.memory_space<vmem>>, vector<1x128x128xbf16>
    %70 = vector.shape_cast %69 : vector<1x128x128xbf16> to vector<128x128xbf16>
    %cst_34 = arith.constant dense<0.000000e+00> : vector<8x128xf32>
    %71 = tpu.matmul %68, %70, %cst_34 {dimension_numbers = #tpu.dot_dimension_numbers<[1], [0], [0], [1], [0, 0, 1, 1], [], []>} : vector<8x128xbf16>, vector<128x128xbf16>, vector<8x128xf32> -> vector<8x128xf32>
    %cst_35 = arith.constant 0.000000e+00 : f32
    %72 = vector.broadcast %cst_35 : f32 to vector<8x128xf32>
    %73 = arith.maximumf %71, %72 : vector<8x128xf32>
    %74 = arith.truncf %73 : vector<8x128xf32> to vector<8x128xbf16>
    %c0_36 = arith.constant 0 : index
    %c0_37 = arith.constant 0 : index
    %c0_38 = arith.constant 0 : index
    %75 = vector.load %arg9[%c0_36, %c0_37, %c0_38] : memref<2x128x128xbf16, #tpu.memory_space<vmem>>, vector<1x128x128xbf16>
    %76 = vector.shape_cast %75 : vector<1x128x128xbf16> to vector<128x128xbf16>
    %cst_39 = arith.constant dense<0.000000e+00> : vector<8x128xf32>
    %77 = tpu.matmul %74, %76, %cst_39 {dimension_numbers = #tpu.dot_dimension_numbers<[1], [0], [0], [1], [0, 0, 1, 1], [], []>} : vector<8x128xbf16>, vector<128x128xbf16>, vector<8x128xf32> -> vector<8x128xf32>
    %78 = arith.addf %53, %77 : vector<8x128xf32>
    %79 = arith.mulf %78, %78 : vector<8x128xf32>
    %cst_40 = arith.constant dense<0.000000e+00> : vector<8xf32>
    %80 = vector.multi_reduction <add>, %79, %cst_40 [1] : vector<8x128xf32> to vector<8xf32>
    %81 = vector.shape_cast %80 : vector<8xf32> to vector<8x1xf32>
    %cst_41 = arith.constant 3.125000e-02 : f32
    %82 = vector.broadcast %cst_41 : f32 to vector<8x1xf32>
    %83 = arith.mulf %81, %82 : vector<8x1xf32>
    %cst_42 = arith.constant 9.99999997E-7 : f32
    %84 = vector.broadcast %cst_42 : f32 to vector<8x1xf32>
    %85 = arith.addf %83, %84 : vector<8x1xf32>
    %86 = math.rsqrt %85 : vector<8x1xf32>
    %87 = vector.broadcast %86 : vector<8x1xf32> to vector<8x128xf32>
    %88 = arith.mulf %78, %87 : vector<8x128xf32>
    %c1 = arith.constant 1 : index
    %c0_43 = arith.constant 0 : index
    %c0_44 = arith.constant 0 : index
    %89 = vector.load %arg4[%c1, %c0_43, %c0_44] : memref<2x1x128xf32, #tpu.memory_space<vmem>>, vector<1x1x128xf32>
    %90 = vector.shape_cast %89 : vector<1x1x128xf32> to vector<1x128xf32>
    %91 = vector.broadcast %90 : vector<1x128xf32> to vector<8x128xf32>
    %92 = arith.mulf %88, %91 : vector<8x128xf32>
    %93 = arith.truncf %92 : vector<8x128xf32> to vector<8x128xbf16>
    %c1_45 = arith.constant 1 : index
    %c0_46 = arith.constant 0 : index
    %c0_47 = arith.constant 0 : index
    %94 = vector.load %arg5[%c1_45, %c0_46, %c0_47] : memref<2x128x128xbf16, #tpu.memory_space<vmem>>, vector<1x128x128xbf16>
    %95 = vector.shape_cast %94 : vector<1x128x128xbf16> to vector<128x128xbf16>
    %cst_48 = arith.constant dense<0.000000e+00> : vector<8x128xf32>
    %96 = tpu.matmul %93, %95, %cst_48 {dimension_numbers = #tpu.dot_dimension_numbers<[1], [0], [0], [1], [0, 0, 1, 1], [], []>} : vector<8x128xbf16>, vector<128x128xbf16>, vector<8x128xf32> -> vector<8x128xf32>
    %97 = vector.extract_strided_slice %96 {offsets = [0, 0], sizes = [8, 32], strides = [1, 1]} : vector<8x128xf32> to vector<8x32xf32>
    %98 = vector.shape_cast %97 : vector<8x32xf32> to vector<8x4x8xf32>
    %99 = arith.truncf %98 : vector<8x4x8xf32> to vector<8x4x8xbf16>
    %100 = vector.extract_strided_slice %96 {offsets = [0, 32], sizes = [8, 32], strides = [1, 1]} : vector<8x128xf32> to vector<8x32xf32>
    %101 = vector.shape_cast %100 : vector<8x32xf32> to vector<8x4x8xf32>
    %102 = arith.truncf %101 : vector<8x4x8xf32> to vector<8x4x8xbf16>
    %103 = vector.extract_strided_slice %96 {offsets = [0, 64], sizes = [8, 32], strides = [1, 1]} : vector<8x128xf32> to vector<8x32xf32>
    %104 = vector.shape_cast %103 : vector<8x32xf32> to vector<8x4x8xf32>
    %105 = arith.truncf %104 : vector<8x4x8xf32> to vector<8x4x8xbf16>
    "tpu.trace_start"() <{level = 10 : i32, message = "qhd,khd->hqk"}> : () -> ()
    %cst_49 = arith.constant dense<0.000000e+00> : vector<4x8x8xf32>
    %106 = tpu.matmul %99, %102, %cst_49 {dimension_numbers = #tpu.dot_dimension_numbers<[2], [2], [0], [0], [0, 1, 0, 0, 1, 0], [1], [1]>} : vector<8x4x8xbf16>, vector<8x4x8xbf16>, vector<4x8x8xf32> -> vector<4x8x8xf32>
    "tpu.trace_stop"() : () -> ()
    %107 = arith.addf %106, %3 : vector<4x8x8xf32>
    %108 = vector.broadcast %2 : vector<1x1x8xf32> to vector<4x8x8xf32>
    %109 = arith.addf %107, %108 : vector<4x8x8xf32>
    %cst_50 = arith.constant dense<0xFF800000> : vector<4x8xf32>
    %110 = vector.multi_reduction <maximumf>, %109, %cst_50 [2] : vector<4x8x8xf32> to vector<4x8xf32>
    %111 = vector.shape_cast %110 : vector<4x8xf32> to vector<4x8x1xf32>
    %112 = vector.broadcast %111 : vector<4x8x1xf32> to vector<4x8x8xf32>
    %113 = arith.subf %109, %112 : vector<4x8x8xf32>
    %114 = math.exp %113 : vector<4x8x8xf32>
    %cst_51 = arith.constant dense<0.000000e+00> : vector<4x8xf32>
    %115 = vector.multi_reduction <add>, %114, %cst_51 [2] : vector<4x8x8xf32> to vector<4x8xf32>
    %116 = vector.shape_cast %115 : vector<4x8xf32> to vector<4x8x1xf32>
    %117 = tpu.reciprocal %116 {approx = true} : vector<4x8x1xf32> -> vector<4x8x1xf32>
    %118 = vector.broadcast %117 : vector<4x8x1xf32> to vector<4x8x8xf32>
    %119 = arith.mulf %114, %118 : vector<4x8x8xf32>
    %120 = arith.truncf %119 : vector<4x8x8xf32> to vector<4x8x8xbf16>
    "tpu.trace_start"() <{level = 10 : i32, message = "hqk,khd->qhd"}> : () -> ()
    %cst_52 = arith.constant dense<0.000000e+00> : vector<4x8x8xf32>
    %121 = tpu.matmul %105, %120, %cst_52 {dimension_numbers = #tpu.dot_dimension_numbers<[0], [2], [2], [1], [0, 1, 0, 2, 1, 1], [1], [0]>} : vector<8x4x8xbf16>, vector<4x8x8xbf16>, vector<4x8x8xf32> -> vector<4x8x8xf32>
    %122 = tpu.transpose %121, [2, 0, 1] : vector<4x8x8xf32> -> vector<8x4x8xf32>
    "tpu.trace_stop"() : () -> ()
    %123 = vector.shape_cast %122 : vector<8x4x8xf32> to vector<8x32xf32>
    %124 = arith.truncf %123 : vector<8x32xf32> to vector<8x32xbf16>
    %c1_53 = arith.constant 1 : index
    %c0_54 = arith.constant 0 : index
    %c0_55 = arith.constant 0 : index
    %125 = vector.load %arg6[%c1_53, %c0_54, %c0_55] : memref<2x32x128xbf16, #tpu.memory_space<vmem>>, vector<1x32x128xbf16>
    %126 = vector.shape_cast %125 : vector<1x32x128xbf16> to vector<32x128xbf16>
    %cst_56 = arith.constant dense<0.000000e+00> : vector<8x128xf32>
    %127 = tpu.matmul %124, %126, %cst_56 {dimension_numbers = #tpu.dot_dimension_numbers<[1], [0], [0], [1], [0, 0, 1, 1], [], []>} : vector<8x32xbf16>, vector<32x128xbf16>, vector<8x128xf32> -> vector<8x128xf32>
    %128 = arith.addf %78, %127 : vector<8x128xf32>
    %129 = arith.mulf %128, %128 : vector<8x128xf32>
    %cst_57 = arith.constant dense<0.000000e+00> : vector<8xf32>
    %130 = vector.multi_reduction <add>, %129, %cst_57 [1] : vector<8x128xf32> to vector<8xf32>
    %131 = vector.shape_cast %130 : vector<8xf32> to vector<8x1xf32>
    %cst_58 = arith.constant 3.125000e-02 : f32
    %132 = vector.broadcast %cst_58 : f32 to vector<8x1xf32>
    %133 = arith.mulf %131, %132 : vector<8x1xf32>
    %cst_59 = arith.constant 9.99999997E-7 : f32
    %134 = vector.broadcast %cst_59 : f32 to vector<8x1xf32>
    %135 = arith.addf %133, %134 : vector<8x1xf32>
    %136 = math.rsqrt %135 : vector<8x1xf32>
    %137 = vector.broadcast %136 : vector<8x1xf32> to vector<8x128xf32>
    %138 = arith.mulf %128, %137 : vector<8x128xf32>
    %c1_60 = arith.constant 1 : index
    %c0_61 = arith.constant 0 : index
    %c0_62 = arith.constant 0 : index
    %139 = vector.load %arg7[%c1_60, %c0_61, %c0_62] : memref<2x1x128xf32, #tpu.memory_space<vmem>>, vector<1x1x128xf32>
    %140 = vector.shape_cast %139 : vector<1x1x128xf32> to vector<1x128xf32>
    %141 = vector.broadcast %140 : vector<1x128xf32> to vector<8x128xf32>
    %142 = arith.mulf %138, %141 : vector<8x128xf32>
    %143 = arith.truncf %142 : vector<8x128xf32> to vector<8x128xbf16>
    %c1_63 = arith.constant 1 : index
    %c0_64 = arith.constant 0 : index
    %c0_65 = arith.constant 0 : index
    %144 = vector.load %arg8[%c1_63, %c0_64, %c0_65] : memref<2x128x128xbf16, #tpu.memory_space<vmem>>, vector<1x128x128xbf16>
    %145 = vector.shape_cast %144 : vector<1x128x128xbf16> to vector<128x128xbf16>
    %cst_66 = arith.constant dense<0.000000e+00> : vector<8x128xf32>
    %146 = tpu.matmul %143, %145, %cst_66 {dimension_numbers = #tpu.dot_dimension_numbers<[1], [0], [0], [1], [0, 0, 1, 1], [], []>} : vector<8x128xbf16>, vector<128x128xbf16>, vector<8x128xf32> -> vector<8x128xf32>
    %cst_67 = arith.constant 0.000000e+00 : f32
    %147 = vector.broadcast %cst_67 : f32 to vector<8x128xf32>
    %148 = arith.maximumf %146, %147 : vector<8x128xf32>
    %149 = arith.truncf %148 : vector<8x128xf32> to vector<8x128xbf16>
    %c1_68 = arith.constant 1 : index
    %c0_69 = arith.constant 0 : index
    %c0_70 = arith.constant 0 : index
    %150 = vector.load %arg9[%c1_68, %c0_69, %c0_70] : memref<2x128x128xbf16, #tpu.memory_space<vmem>>, vector<1x128x128xbf16>
    %151 = vector.shape_cast %150 : vector<1x128x128xbf16> to vector<128x128xbf16>
    %cst_71 = arith.constant dense<0.000000e+00> : vector<8x128xf32>
    %152 = tpu.matmul %149, %151, %cst_71 {dimension_numbers = #tpu.dot_dimension_numbers<[1], [0], [0], [1], [0, 0, 1, 1], [], []>} : vector<8x128xbf16>, vector<128x128xbf16>, vector<8x128xf32> -> vector<8x128xf32>
    %153 = arith.addf %128, %152 : vector<8x128xf32>
    %154 = arith.mulf %153, %153 : vector<8x128xf32>
    %cst_72 = arith.constant dense<0.000000e+00> : vector<8xf32>
    %155 = vector.multi_reduction <add>, %154, %cst_72 [1] : vector<8x128xf32> to vector<8xf32>
    %156 = vector.shape_cast %155 : vector<8xf32> to vector<8x1xf32>
    %cst_73 = arith.constant 3.125000e-02 : f32
    %157 = vector.broadcast %cst_73 : f32 to vector<8x1xf32>
    %158 = arith.mulf %156, %157 : vector<8x1xf32>
    %cst_74 = arith.constant 9.99999997E-7 : f32
    %159 = vector.broadcast %cst_74 : f32 to vector<8x1xf32>
    %160 = arith.addf %158, %159 : vector<8x1xf32>
    %161 = math.rsqrt %160 : vector<8x1xf32>
    %162 = vector.broadcast %161 : vector<8x1xf32> to vector<8x128xf32>
    %163 = arith.mulf %153, %162 : vector<8x128xf32>
    %c0_75 = arith.constant 0 : index
    %c0_76 = arith.constant 0 : index
    %164 = vector.load %arg10[%c0_75, %c0_76] : memref<1x128xf32, #tpu.memory_space<vmem>>, vector<1x128xf32>
    %165 = vector.broadcast %164 : vector<1x128xf32> to vector<8x128xf32>
    %166 = arith.mulf %163, %165 : vector<8x128xf32>
    %c0_77 = arith.constant 0 : index
    %c0_78 = arith.constant 0 : index
    %c0_79 = arith.constant 0 : index
    %167 = vector.load %arg11[%c0_77, %c0_78, %c0_79] : memref<1x8x128xf32, #tpu.memory_space<vmem>>, vector<1x8x128xf32>
    %168 = vector.shape_cast %167 : vector<1x8x128xf32> to vector<8x128xf32>
    %169 = vector.shape_cast %166 : vector<8x128xf32> to vector<1x8x128xf32>
    tpu.vector_store %arg11[%c0_77, %c0_78, %c0_79], %169 {strides = array<i32>} : memref<1x8x128xf32, #tpu.memory_space<vmem>>, vector<1x8x128xf32>,
    return
  }
  func.func @transform_0(%arg0: i32) -> (i32, i32, i32) {
    %c0_i32 = arith.constant 0 : i32
    %c0_i32_0 = arith.constant 0 : i32
    %c0_i32_1 = arith.constant 0 : i32
    return %arg0, %c0_i32, %c0_i32_0 : i32, i32, i32
  }
  func.func @transform_1(%arg0: i32) -> (i32, i32, i32) {
    %c0_i32 = arith.constant 0 : i32
    %c0_i32_0 = arith.constant 0 : i32
    %c0_i32_1 = arith.constant 0 : i32
    %c0_i32_2 = arith.constant 0 : i32
    return %c0_i32, %c0_i32_0, %c0_i32_1 : i32, i32, i32
  }
  func.func @transform_2(%arg0: i32) -> (i32, i32, i32) {
    %c0_i32 = arith.constant 0 : i32
    %c0_i32_0 = arith.constant 0 : i32
    %c0_i32_1 = arith.constant 0 : i32
    return %arg0, %c0_i32, %c0_i32_0 : i32, i32, i32
  }
  func.func @transform_3(%arg0: i32) -> (i32, i32, i32) {
    %c0_i32 = arith.constant 0 : i32
    %c0_i32_0 = arith.constant 0 : i32
    %c0_i32_1 = arith.constant 0 : i32
    %c0_i32_2 = arith.constant 0 : i32
    return %c0_i32, %c0_i32_0, %c0_i32_1 : i32, i32, i32
  }
  func.func @transform_4(%arg0: i32) -> (i32, i32, i32) {
    %c0_i32 = arith.constant 0 : i32
    %c0_i32_0 = arith.constant 0 : i32
    %c0_i32_1 = arith.constant 0 : i32
    %c0_i32_2 = arith.constant 0 : i32
    return %c0_i32, %c0_i32_0, %c0_i32_1 : i32, i32, i32
  }
  func.func @transform_5(%arg0: i32) -> (i32, i32, i32) {
    %c0_i32 = arith.constant 0 : i32
    %c0_i32_0 = arith.constant 0 : i32
    %c0_i32_1 = arith.constant 0 : i32
    %c0_i32_2 = arith.constant 0 : i32
    return %c0_i32, %c0_i32_0, %c0_i32_1 : i32, i32, i32
  }
  func.func @transform_6(%arg0: i32) -> (i32, i32, i32) {
    %c0_i32 = arith.constant 0 : i32
    %c0_i32_0 = arith.constant 0 : i32
    %c0_i32_1 = arith.constant 0 : i32
    %c0_i32_2 = arith.constant 0 : i32
    return %c0_i32, %c0_i32_0, %c0_i32_1 : i32, i32, i32
  }
  func.func @transform_7(%arg0: i32) -> (i32, i32, i32) {
    %c0_i32 = arith.constant 0 : i32
    %c0_i32_0 = arith.constant 0 : i32
    %c0_i32_1 = arith.constant 0 : i32
    %c0_i32_2 = arith.constant 0 : i32
    return %c0_i32, %c0_i32_0, %c0_i32_1 : i32, i32, i32
  }
  func.func @transform_8(%arg0: i32) -> (i32, i32, i32) {
    %c0_i32 = arith.constant 0 : i32
    %c0_i32_0 = arith.constant 0 : i32
    %c0_i32_1 = arith.constant 0 : i32
    %c0_i32_2 = arith.constant 0 : i32
    return %c0_i32, %c0_i32_0, %c0_i32_1 : i32, i32, i32
  }
  func.func @transform_9(%arg0: i32) -> (i32, i32) {
    %c0_i32 = arith.constant 0 : i32
    %c0_i32_0 = arith.constant 0 : i32
    %c0_i32_1 = arith.constant 0 : i32
    return %c0_i32, %c0_i32_0 : i32, i32
  }
  func.func @transform_10(%arg0: i32) -> (i32, i32, i32) {
    %c0_i32 = arith.constant 0 : i32
    %c0_i32_0 = arith.constant 0 : i32
    %c0_i32_1 = arith.constant 0 : i32
    return %arg0, %c0_i32, %c0_i32_0 : i32, i32, i32
  }
}

</mosaic_0001>

<bundles_post_ra>
// kernel: t5_fewshot_forward.1
= control target key start
LH: loop header
LB: loop body
LE: loop exit
PB: predicated region body
PF: predicated region fallthrough
CT: control target
= control target key end

     0   :  { %s6642_s0 = inlined_call_operand.vmem [shape: f32[2,8,128], index: 0, kind: input, shape index: {}]   ;;  %s6643_s1 = inlined_call_operand.vmem [shape: f32[4,8,8], index: 1, kind: input, shape index: {}]   ;;  %s6644_s2 = inlined_call_operand.vmem [shape: f32[2,1,8], index: 2, kind: input, shape index: {}]   ;;  %s6645_s3 = inlined_call_operand.vmem [shape: f32[2,1,128], index: 3, kind: input, shape index: {}]   ;;  %s6646_s4 = inlined_call_operand.vmem [shape: bf16[2,128,128], index: 4, kind: input, shape index: {}]   ;;  %s6647_s5 = inlined_call_operand.vmem [shape: bf16[2,32,128], index: 5, kind: input, shape index: {}]   ;;  %s6648_s6 = inlined_call_operand.vmem [shape: f32[2,1,128], index: 6, kind: input, shape index: {}]   ;;  %s6649_s7 = inlined_call_operand.vmem [shape: bf16[2,128,128], index: 7, kind: input, shape index: {}]   ;;  %s6650_s8 = inlined_call_operand.vmem [shape: bf16[2,128,128], index: 8, kind: input, shape index: {}]   ;;  %s6651_s9 = inlined_call_operand.vmem [shape: f32[1,128], index: 9, kind: input, shape index: {}]   ;;  %s6652_s10 = inlined_call_operand.hbm [shape: f32[2,8,128], index: 10, kind: output, shape index: {}]  }
   0x1   :  { %6661 = sst [smem:[#allocation5_spill]] %s6642_s0 }
   0x2   :  { %15 = vsyncpa [#allocation3], 0 }
   0x3   :  { %17 = vsyncpa [#allocation3 + $0x1], 0  ;;  %s5786_s13 = smov 0   ;;  %s5788_s14 = smov 0  }
   0x4   :  { %s5790_s15 = smov 0   ;;  %s5792_s16 = smov 0  }
   0x5 LB: > { %s5807_s17 = sadd.s32 4294967295, %s5715_s16   ;;  %s5025_s18 = sadd.s32 4294967294, %s5715_s16   ;;  %s5715_s16 = sphi %s5792_s16, %s6674_s16   ;;  %s5711_s15 = sphi %s5790_s15, %s6673_s15   ;;  %s5707_s14 = sphi %s5788_s14, %s6672_s14   ;;  %s5703_s13 = sphi %s5786_s13, %s6671_s13  }
   0x6   : > { %s5811_s19 = sadd.s32 1, %s5715_s16   ;;  %s250_s20 = sadd.s32 1, %s5711_s15 }
   0x7   : > { %s247_s21 = ssub.s32 %s5715_s16, %s5811_s19  ;;  %p260_p0 = scmp.ne.s32.totalorder %s5711_s15, %s5707_s14 }
   0x8   : > { %p248_p1 = scmp.eq.s32.totalorder %s247_s21, 0  ;;  %p261_p2 = scmp.eq.s32.totalorder %s5807_s17, 1 }
   0x9   : > { %p266_p3 = scmp.ne.s32.totalorder %s5707_s14, %s5703_s13  ;;  %p267_p4 = scmp.eq.s32.totalorder %s5025_s18, 1 }
   0xa   : > { %s5822_s22 = scalar_select %p248_p1, %s5711_s15, %s250_s20  }
   0xb   : > { %p5824_p5 = por %p261_p2, %p260_p0  ;;  %p5828_p6 = por %p267_p4, %p266_p3 }
   0xc   : > { %p5028_p7 = scmp.ge.s32.totalorder %s5715_s16, 1  ;;  %p322_p8 = scmp.lt.s32.totalorder %s5715_s16, 3 }
   0xe   : > { %p323_p9 = pnand %p5028_p7, %p322_p8 }
   0xf   : > { %p362_p10 = scmp.lt.s32.totalorder (!%p323_p9), %s5807_s17, 1  ;;  %v5717_v0 = vmov (!%p323_p9), 0.0   ;;  %v5553_v1 = vld [vmem:[%s6646_s4] sm:$0xff] (!%p323_p9)   ;;  %v5554_v2 = vld [vmem:[%s6646_s4 + $0x8] sm:$0xff] (!%p323_p9)   ;;  %s6664_s0 = sld [smem:[#allocation5_spill]] (!%p323_p9)  ;;  %v5555_v3 = vld [vmem:[%s6646_s4 + $0x10] sm:$0xff] (!%p323_p9)   ;;  %v511_v30 = vlaneseq (!%p323_p9) }
  0x10   : > { %326 = sbr.rel (%p323_p9) target bundleno = 5837 (0x16cd), region = 60  ;;  %5269 = vmatprep.subr.bf16.mxu0 (!%p323_p9), %v5717_v0  ;;  %5289 = vmatprep.subr.bf16.mxu1 (!%p323_p9), %v5717_v0  ;;  %v5556_v6 = vld [vmem:[%s6646_s4 + $0x18] sm:$0xff] (!%p323_p9)   ;;  %v5557_v7 = vld [vmem:[%s6646_s4 + $0x20] sm:$0xff] (!%p323_p9)   ;;  %v5558_v8 = vld [vmem:[%s6646_s4 + $0x28] sm:$0xff] (!%p323_p9)   ;;  %vm5718_vm0 = vmmov (!%p323_p9), 0   ;;  %s5719_s29 = smov (!%p323_p9), 112  }
  0x11   : > { %5270 = vmatpush3.bf16.msra.mxu0 (!%p323_p9), %v5553_v1  ;;  %5285 = vmatprep.mubr.msk.bf16.mxu0 (!%p323_p9), %vm5718_vm0, %v5717_v0  ;;  %v5559_v9 = vld [vmem:[%s6646_s4 + $0x30] sm:$0xff] (!%p323_p9)   ;;  %v5560_v10 = vld [vmem:[%s6646_s4 + $0x38] sm:$0xff] (!%p323_p9)   ;;  %v5031_v15 = vld [vmem:[%s6645_s3] ss:$0 sm:$0xff] (!%p323_p9)  ;;  %s6660_s11 = smov (!%p323_p9), 104   ;;  %s6658_s12 = smov (!%p323_p9), 96  }
  0x12   : > { %5271 = vmatprep.subr.bf16.mxu0 (!%p323_p9), %v5717_v0  ;;  %5291 = vmatprep.mubr.msk.bf16.mxu1 (!%p323_p9), %vm5718_vm0, %v5717_v0  ;;  %v5723_v28 = vmov (!%p323_p9), 1983009808   ;;  %v512_v33 = vshrl.u32 (!%p323_p9), %v511_v30, 7  ;;  %v5724_v34 = vmov (!%p323_p9), 1934713408   ;;  %s6653_s20 = smov (!%p323_p9), 64  }
  0x13   : > { %v509_v29 = vunpack.c.l.s4 (!%p323_p9), %v5723_v28  ;;  %v541_v35 = vunpack.c.l.s4 (!%p323_p9), %v5724_v34  ;;  %vm1242_vm1 = vcmask (!%p323_p9), 1043456   ;;  %vm1238_vm2 = vcmask (!%p323_p9), 64512   ;;  %s6657_s21 = smov (!%p323_p9), 16   ;;  %s6665_s25 = smov (!%p323_p9), 104  }
  0x14   : > { %vm2361_vm3 = vcmask (!%p323_p9), 130048   ;;  %vm2363_vm4 = vcmask (!%p323_p9), 195584   ;;  %vm2382_vm5 = vcmask (!%p323_p9), 261120   ;;  %s6666_s28 = smov (!%p323_p9), 96  }
  0x15   : > { %5272 = vmatpush3.bf16.msra.mxu0 (!%p323_p9), %v5554_v2  ;;  %v510_v32 = vunpack.c.0.s8 (!%p323_p9), %v509_v29  ;;  %v542_v40 = vunpack.c.0.s8 (!%p323_p9), %v541_v35 }
  0x16   : > { %5273 = vmatprep.subr.bf16.mxu0 (!%p323_p9), %v5717_v0 }
  0x17   : > { %s5841_s27 = scalar_select %p362_p10, %s5807_s17, 1  ;;  %v5910_v39 = vsub.s32 %v510_v32, %v512_v33  ;;  %v5916_v47 = vsub.s32 %v542_v40, %v512_v33  ;;  %v5725_v40 = vmov 0  }
  0x19   : > { %s5030_s30 = sshll.u32 %s5841_s27, 3  ;;  %5274 = vmatpush3.bf16.msra.mxu0 %v5555_v3  ;;  %s6022_s26 = scalar_lea.vmem %s6644_s2, %s5841_s27 }
  0x1a   : > { %s5851_s18 = scalar_lea.vmem %s6664_s0, %s5030_s30  ;;  %5275 = vmatprep.subr.bf16.mxu0 %v5717_v0  ;;  %s5720_s30 = smov 120  }
  0x1b   : > { %v370_v4 = vld [vmem:[%s5851_s18] sm:$0xff]  ;;  %s6656_s27 = smov 8  }
  0x1c   : > { %v376_v5 = vmul.f32 %v370_v4, %v370_v4 }
  0x1d   : > { %5276 = vmatpush3.bf16.msra.mxu0 %v5556_v6 }
  0x1e   : > { %377 = vadd.xlane.f32.xlu0 %v376_v5  ;;  %5277 = vmatprep.subr.bf16.mxu0 %v5717_v0 }
  0x21   : > { %5278 = vmatpush3.bf16.msra.mxu0 %v5557_v7 }
  0x22   : > { %5279 = vmatprep.subr.bf16.mxu0 %v5717_v0 }
  0x25   : > { %5280 = vmatpush3.bf16.msra.mxu0 %v5558_v8 }
  0x26   : > { %5281 = vmatprep.subr.bf16.mxu0 %v5717_v0 }
  0x29   : > { %5282 = vmatpush3.bf16.msra.mxu0 %v5559_v9 }
  0x2a   : > { %5283 = vmatprep.subr.bf16.mxu0 %v5717_v0 }
  0x2d   : > { %5284 = vmatpush3.bf16.msra.mxu0 %v5560_v10 }
  0x2e   : > { %5319 = vmatprep.subr.bf16.mxu0 %v5717_v0 }
  0xab   : > { %v378_v11 = vpop.xlane.xlu0 %377 }
  0xac   : > { %v379_v12 = vmul.f32 0.03125, %v378_v11 }
  0xae   : > { %v380_v13 = vadd.f32 1e-06, %v379_v12 }
  0xb0   : > { %5605 = vrsqrt.f32 %v380_v13 }
  0xba   : > { %v5606_v14 = vpop.eup %5605 }
  0xbb   : > { %v382_v16 = vmul.f32 %v5606_v14, %v370_v4 }
  0xbd   : > { %v390_v17 = vmul.f32 %v5031_v15, %v382_v16 }
  0xbf   : > { %v391_v18 = vpack.c.bf16 %v390_v17, %v390_v17 }
  0xc1   : > { %5286 = vmatmul.mubr.bf16.vlgmr.msra.gmra.mrb[0].mxu0 %v391_v18 }
  0xc2   : > { %5321 = vmatprep.mubr.msk.bf16.mxu0 %vm5718_vm0, %v5717_v0 }
 0x194   : > { %v5888_v19 = vpop.f32.mrb[0].mxu0 }
 0x195   : > { %500 = vrot.lane.b32.xlu1 %v5888_v19, %s5719_s29  ;;  %497 = vrot.lane.b32.xlu0 %v5888_v19, %s5720_s30  ;;  %v5287_v20 = vpop.f32.mrb[1].mxu0 }
 0x196   : > { %v493_v21 = vpop.f32.mrb[2].mxu0 }
 0x197   : > { %v5288_v22 = vpop.f32.mrb[3].mxu0 }
 0x199   : > { %503 = vrot.lane.b32.xlu1 %v5888_v19, %s6660_s11 }
 0x19d   : > { %582 = vrot.lane.b32.xlu1 %v5888_v19, %s6658_s12 }
 0x207   : > { %v5898_v23 = vpop.permute.xlu0 %497  ;;  %v5902_v24 = vpop.permute.xlu1 %500 }
 0x208   : > { %584 = vrot.lane.b32.xlu1 %v5898_v23, %s6658_s12 }
 0x20b   : > { %v5906_v25 = vpop.permute.xlu1 %503 }
 0x20c   : > { %586 = vrot.lane.b32.xlu1 %v5902_v24, %s6658_s12 }
 0x20f   : > { %v583_v26 = vpop.permute.xlu1 %582 }
 0x210   : > { %588 = vrot.lane.b32.xlu1 %v5906_v25, %s6658_s12  ;;  %s6670_s12 = smov 24  }
 0x27a   : > { %v585_v27 = vpop.permute.xlu1 %584 }
 0x27e   : > { %v587_v31 = vpop.permute.xlu1 %586 }
 0x27f   : > { %v594_v36 = vcombine.low %v583_v26, %v587_v31  ;;  %v595_v37 = vcombine.high %v583_v26, %v587_v31 }
 0x281   : > { %v602_v43 = vrot.slane %v594_v36, %v5910_v39  ;;  %v609_v44 = vrot.slane %v595_v37, %v5910_v39 }
 0x282   : > { %v589_v38 = vpop.permute.xlu1 %588 }
 0x283   : > { %v610_v41 = vcombine.low %v585_v27, %v589_v38  ;;  %v611_v42 = vcombine.high %v585_v27, %v589_v38 }
 0x285   : > { %v618_v45 = vrot.slane %v610_v41, %v5910_v39  ;;  %v625_v46 = vrot.slane %v611_v42, %v5910_v39 }
 0x287   : > { %v627_v48 = vcombine.high %v602_v43, %v618_v45  ;;  %v626_v49 = vcombine.low %v602_v43, %v618_v45  ;;  %v642_v50 = vcombine.low %v609_v44, %v625_v46  ;;  %v643_v53 = vcombine.high %v609_v44, %v625_v46 }
 0x289   : > { %v641_v51 = vrot.slane %v627_v48, %v5916_v47  ;;  %v634_v52 = vrot.slane %v626_v49, %v5916_v47  ;;  %v650_v56 = vrot.slane %v642_v50, %v5916_v47  ;;  %v657_v58 = vrot.slane %v643_v53, %v5916_v47 }
 0x28b   : > { %v664_v54 = vpack.c.bf16 %v641_v51, %v641_v51  ;;  %v662_v55 = vpack.c.bf16 %v634_v52, %v634_v52  ;;  %v659_v57 = vcombine.high %v641_v51, %v5717_v0  ;;  %v666_v59 = vpack.c.bf16 %v650_v56, %v650_v56 }
 0x28c   : > { %v660_v61 = vcombine.high %v650_v56, %v5717_v0  ;;  %v658_v62 = vcombine.high %v634_v52, %v5717_v0  ;;  %v661_v2 = vcombine.high %v657_v58, %v5717_v0  ;;  %v668_v4 = vpack.c.bf16 %v657_v58, %v657_v58 }
 0x28d   : > { %852 = vxpose.xlu0.c.b16.start.end [1/1] (short) (narrow) %v664_v54, 16  ;;  %820 = vxpose.xlu1.c.b16.start.end [1/1] (short) (narrow) %v662_v55, 16  ;;  %v665_v60 = vpack.c.bf16 %v659_v57, %v659_v57  ;;  %v522_v56 = vcombine.low %v5898_v23, %v5906_v25  ;;  %v523_v57 = vcombine.high %v5898_v23, %v5906_v25 }
 0x28e   : > { %v667_v63 = vpack.c.bf16 %v660_v61, %v660_v61  ;;  %v663_v1 = vpack.c.bf16 %v658_v62, %v658_v62  ;;  %v669_v3 = vpack.c.bf16 %v661_v2, %v661_v2  ;;  %v506_v58 = vcombine.low %v5888_v19, %v5902_v24 }
 0x28f   : > { %v537_v61 = vrot.slane %v523_v57, %v5910_v39 }
 0x290   : > { %v514_v62 = vrot.slane %v506_v58, %v5910_v39 }
 0x291   : > { %884 = vxpose.xlu0.c.b16.start.end [1/1] (short) (narrow) %v666_v59, 16  ;;  %868 = vxpose.xlu1.c.b16.start.end [1/1] (short) (narrow) %v665_v60, 16  ;;  %v507_v59 = vcombine.high %v5888_v19, %v5902_v24  ;;  %v530_v60 = vrot.slane %v522_v56, %v5910_v39 }
 0x295   : > { %900 = vxpose.xlu1.c.b16.start.end [1/1] (short) (narrow) %v667_v63, 16  ;;  %836 = vxpose.xlu0.c.b16.start.end [1/1] (short) (narrow) %v663_v1, 16  ;;  %v521_v63 = vrot.slane %v507_v59, %v5910_v39  ;;  %v538_v1 = vcombine.low %v514_v62, %v530_v60 }
 0x297   : > { %v554_v2 = vcombine.low %v521_v63, %v537_v61 }
 0x299   : > { %932 = vxpose.xlu1.c.b16.start.end [1/1] (short) (narrow) %v669_v3, 16  ;;  %916 = vxpose.xlu0.c.b16.start.end [1/1] (short) (narrow) %v668_v4, 16  ;;  %v539_v3 = vcombine.high %v514_v62, %v530_v60  ;;  %v555_v4 = vcombine.high %v521_v63, %v537_v61 }
 0x2f3   : > { %v860_v5 = vpop.trf.xlu0  ;;  %v828_v6 = vpop.trf.xlu1 }
 0x2f7   : > { %v892_v7 = vpop.trf.xlu0  ;;  %v876_v8 = vpop.trf.xlu1 }
 0x2f8   : > { %v948_v11 = vcombine.low %v828_v6, %v892_v7 }
 0x2fa   : > { %v955_v17 = vrot.slane %v948_v11, %v5910_v39 }
 0x2fb   : > { %v908_v9 = vpop.trf.xlu1  ;;  %v844_v10 = vpop.trf.xlu0 }
 0x2fc   : > { %v982_v12 = vcombine.low %v844_v10, %v908_v9 }
 0x2fe   : > { %v989_v18 = vrot.slane %v982_v12, %v5910_v39 }
 0x2ff   : > { %v940_v13 = vpop.trf.xlu1  ;;  %v924_v14 = vpop.trf.xlu0 }
 0x300   : > { %v990_v15 = vcombine.low %v876_v8, %v940_v13  ;;  %v956_v16 = vcombine.low %v860_v5, %v924_v14 }
 0x302   : > { %v997_v20 = vrot.slane %v990_v15, %v5910_v39  ;;  %v963_v21 = vrot.slane %v956_v16, %v5910_v39 }
 0x304   : > { %v998_v22 = vcombine.low %v989_v18, %v997_v20  ;;  %v999_v26 = vcombine.high %v989_v18, %v997_v20  ;;  %v964_v27 = vcombine.low %v955_v17, %v963_v21  ;;  %v965_v28 = vcombine.high %v955_v17, %v963_v21 }
 0x306   : > { %v972_v29 = vrot.slane %v964_v27, %v5916_v47  ;;  %v1006_v30 = vrot.slane %v998_v22, %v5916_v47  ;;  %v979_v31 = vrot.slane %v965_v28, %v5916_v47  ;;  %v1013_v32 = vrot.slane %v999_v26, %v5916_v47 }
 0x308   : > { %v1018_v33 = vpack.i.b16 %v1006_v30, %v972_v29  ;;  %v1020_v34 = vshrl.u32 %v972_v29, 16  ;;  %v1021_v35 = vshrl.u32 %v1006_v30, 16  ;;  %v1036_v36 = vshrl.u32 %v979_v31, 16 }
 0x309   : > { %v1037_v38 = vshrl.u32 %v1013_v32, 16  ;;  %v980_v41 = vcombine.high %v972_v29, %v5725_v40  ;;  %v1014_v42 = vcombine.high %v1006_v30, %v5725_v40  ;;  %v1034_v43 = vpack.i.b16 %v1013_v32, %v979_v31 }
 0x30a   : > { %1048 = vxpose.xlu0.c.b16.start.end [1/1] (short) (narrow) %v1018_v33, 16  ;;  %v1022_v37 = vpack.i.b16 %v1021_v35, %v1020_v34  ;;  %v981_v44 = vcombine.high %v979_v31, %v5725_v40  ;;  %v1015_v49 = vcombine.high %v1013_v32, %v5725_v40 }
 0x30b   : > { %v1038_v45 = vpack.i.b16 %v1037_v38, %v1036_v36  ;;  %v1028_v46 = vshrl.u32 %v980_v41, 16  ;;  %v1029_v48 = vshrl.u32 %v1014_v42, 16  ;;  %v1026_v50 = vpack.i.b16 %v1014_v42, %v980_v41 }
 0x30c   : > { %1064 = vxpose.xlu1.c.b16.start.end [1/1] (short) (narrow) %v1022_v37, 16  ;;  %v1044_v52 = vshrl.u32 %v981_v44, 16  ;;  %v1045_v53 = vshrl.u32 %v1015_v49, 16  ;;  %v1042_v54 = vpack.i.b16 %v1015_v49, %v981_v44 }
 0x30d   : > { %v1030_v51 = vpack.i.b16 %v1029_v48, %v1028_v46 }
 0x30e   : > { %1112 = vxpose.xlu0.c.b16.start.end [1/1] (short) (narrow) %v1034_v43, 16  ;;  %v1046_v55 = vpack.i.b16 %v1045_v53, %v1044_v52 }
 0x310   : > { %1128 = vxpose.xlu1.c.b16.start.end [1/1] (short) (narrow) %v1038_v45, 16 }
 0x312   : > { %1080 = vxpose.xlu0.c.b16.start.end [1/1] (short) (narrow) %v1026_v50, 16 }
 0x314   : > { %1096 = vxpose.xlu1.c.b16.start.end [1/1] (short) (narrow) %v1030_v51, 16 }
 0x316   : > { %1144 = vxpose.xlu0.c.b16.start.end [1/1] (short) (narrow) %v1042_v54, 16 }
 0x318   : > { %1160 = vxpose.xlu1.c.b16.start.end [1/1] (short) (narrow) %v1046_v55, 16 }
 0x31c   : > { %672 = vrot.lane.b32.xlu1 %v5898_v23, %s6653_s20  ;;  %v546_v23 = vrot.slane %v538_v1, %v5916_v47 }
 0x31e   : > { %v570_v8 = vcombine.high %v546_v23, %v5717_v0 }
 0x31f   : > { %670 = vrot.lane.b32.xlu0 %v5888_v19, %s6653_s20  ;;  %v553_v19 = vrot.slane %v539_v3, %v5916_v47 }
 0x320   : > { %674 = vrot.lane.b32.xlu1 %v5902_v24, %s6653_s20  ;;  %v569_v24 = vrot.slane %v555_v4, %v5916_v47 }
 0x321   : > { %v571_v11 = vcombine.high %v553_v19, %v5717_v0 }
 0x322   : > { %v573_v12 = vcombine.high %v569_v24, %v5717_v0  ;;  %v5041_v21 = vpack.c.bf16 %v569_v24, %v553_v19 }
 0x323   : > { %676 = vrot.lane.b32.xlu0 %v5906_v25, %s6653_s20  ;;  %v562_v25 = vrot.slane %v554_v2, %v5916_v47  ;;  %s6655_s20 = smov 24  }
 0x324   : > { %v5043_v17 = vpack.c.bf16 %v573_v12, %v571_v11  ;;  %v773_v37 = vrot.slane %v5041_v21, %v5910_v39 }
 0x325   : > { %v572_v9 = vcombine.high %v562_v25, %v5717_v0  ;;  %v5040_v18 = vpack.c.bf16 %v562_v25, %v546_v23 }
 0x326   : > { %v798_v32 = vrot.slane %v5043_v17, %v5910_v39 }
 0x327   : > { %v5042_v15 = vpack.c.bf16 %v572_v9, %v570_v8  ;;  %v765_v33 = vrot.slane %v5040_v18, %v5910_v39 }
 0x329   : > { %v790_v28 = vrot.slane %v5042_v15, %v5910_v39  ;;  %v774_v44 = vcombine.low %v765_v33, %v773_v37  ;;  %v372_v15 = vld [vmem:[%s6643_s1] sm:$0xff] }
 0x32b   : > { %v799_v42 = vcombine.low %v790_v28, %v798_v32  ;;  %v781_v51 = vrot.slane %v774_v44, %v5916_v47  ;;  %v373_v28 = vld [vmem:[%s6643_s1 + $0x8] sm:$0xff] }
 0x32d   : > { %v806_v46 = vrot.slane %v799_v42, %v5916_v47  ;;  %v811_v60 = vshrl.u32 %v781_v51, 16  ;;  %v782_v24 = vcombine.high %v781_v51, %v5725_v40 }
 0x32f   : > { %v810_v53 = vpack.i.b16 %v806_v46, %v781_v51  ;;  %v812_v57 = vshrl.u32 %v806_v46, 16  ;;  %v807_v23 = vcombine.high %v806_v46, %v5725_v40 }
 0x331   : > { %v813_v63 = vpack.i.b16 %v812_v57, %v811_v60  ;;  %v818_v12 = vshrl.u32 %v807_v23, 16 }
 0x370   : > { %v1056_v5 = vpop.trf.xlu0 }
 0x372   : > { %v1072_v6 = vpop.trf.xlu1 }
 0x374   : > { %v1120_v7 = vpop.trf.xlu0 }
 0x375   : > { %v1176_v16 = vcombine.low %v1056_v5, %v1120_v7 }
 0x376   : > { %v1136_v10 = vpop.trf.xlu1 }
 0x377   : > { %v1201_v22 = vcombine.low %v1072_v6, %v1136_v10  ;;  %v1183_v29 = vrot.slane %v1176_v16, %v5910_v39  ;;  %v816_v10 = vpack.i.b16 %v807_v23, %v782_v24  ;;  %v5048_v16 = vld [vmem:[%s6022_s26] ss:$0 sm:$0xff] }
 0x378   : > { %v1088_v13 = vpop.trf.xlu0 }
 0x379   : > { %v1208_v34 = vrot.slane %v1201_v22, %v5910_v39 }
 0x37a   : > { %v1104_v14 = vpop.trf.xlu1 }
 0x37c   : > { %v1152_v20 = vpop.trf.xlu0 }
 0x37d   : > { %v1184_v26 = vcombine.low %v1088_v13, %v1152_v20  ;;  %v817_v13 = vshrl.u32 %v782_v24, 16 }
 0x37e   : > { %v1168_v27 = vpop.trf.xlu1 }
 0x37f   : > { %v1191_v30 = vrot.slane %v1184_v26, %v5910_v39  ;;  %v1209_v31 = vcombine.low %v1104_v14, %v1168_v27  ;;  %v819_v14 = vpack.i.b16 %v818_v12, %v817_v13 }
 0x381   : > { %v1192_v35 = vcombine.low %v1183_v29, %v1191_v30  ;;  %v1216_v36 = vrot.slane %v1209_v31, %v5910_v39 }
 0x383   : > { %v1217_v38 = vcombine.low %v1208_v34, %v1216_v36  ;;  %v1199_v41 = vrot.slane %v1192_v35, %v5916_v47 }
 0x385   : > { %v1224_v43 = vrot.slane %v1217_v38, %v5916_v47  ;;  %v1229_v48 = vshrl.u32 %v1199_v41, 16  ;;  %v1200_v58 = vcombine.high %v1199_v41, %v5725_v40 }
 0x387   : > { %v1228_v45 = vpack.i.b16 %v1224_v43, %v1199_v41  ;;  %v1230_v49 = vshrl.u32 %v1224_v43, 16  ;;  %v1225_v55 = vcombine.high %v1224_v43, %v5725_v40  ;;  %v1235_v25 = vshrl.u32 %v1200_v58, 16 }
 0x389   : > { %v1244_v50 = vsel %vm1242_vm1, %v1228_v45, 0  ;;  %v1231_v52 = vpack.i.b16 %v1230_v49, %v1229_v48  ;;  %v1234_v61 = vpack.i.b16 %v1225_v55, %v1200_v58  ;;  %v1236_v4 = vshrl.u32 %v1225_v55, 16  ;;  %v374_v55 = vld [vmem:[%s6643_s1 + $0x10] sm:$0xff] }
 0x38a   : > { %5290 = vmatpush3.bf16.msra.mxu1 %v1244_v50 }
 0x38b   : > { %5295 = vmatprep.subr.bf16.mxu1 %v5717_v0  ;;  %v1290_v54 = vsel %vm1242_vm1, %v1231_v52, 0  ;;  %v1336_v2 = vsel %vm1242_vm1, %v1234_v61, 0  ;;  %v1237_v7 = vpack.i.b16 %v1236_v4, %v1235_v25 }
 0x38d   : > { %5292 = vmatmul.mubr.msk.bf16.vlgmr.msra.gmra.mrb[0].mxu1 %vm1238_vm2, %v810_v53  ;;  %v1382_v11 = vsel %vm1242_vm1, %v1237_v7, 0 }
 0x38e   : > { %v5983_v56 = vpop.permute.xlu1 %672  ;;  %5296 = vmatpush3.bf16.msra.mxu1 %v1290_v54  ;;  %5297 = vmatprep.mubr.msk.bf16.mxu1 %vm5718_vm0, %v5717_v0 }
 0x38f   : > { %5301 = vmatprep.subr.bf16.mxu1 %v5717_v0 }
 0x391   : > { %v5989_v59 = vpop.permute.xlu0 %670 }
 0x392   : > { %v675_v62 = vpop.permute.xlu1 %674 }
 0x393   : > { %v683_v1 = vcombine.high %v5989_v59, %v675_v62  ;;  %v682_v48 = vcombine.low %v5989_v59, %v675_v62  ;;  %v375_v59 = vld [vmem:[%s6643_s1 + $0x18] sm:$0xff] }
 0x395   : > { %5298 = vmatmul.mubr.msk.bf16.vlgmr.msra.gmra.mrb[4].mxu1 %vm1238_vm2, %v813_v63  ;;  %v677_v3 = vpop.permute.xlu0 %676  ;;  %v6000_v6 = vrot.slane %v683_v1, %v5910_v39  ;;  %v690_v50 = vrot.slane %v682_v48, %v5910_v39 }
 0x396   : > { %5302 = vmatpush3.bf16.msra.mxu1 %v1336_v2  ;;  %v699_v5 = vcombine.high %v5983_v56, %v677_v3  ;;  %5303 = vmatprep.mubr.msk.bf16.mxu1 %vm5718_vm0, %v5717_v0  ;;  %v698_v46 = vcombine.low %v5983_v56, %v677_v3 }
 0x397   : > { %5307 = vmatprep.subr.bf16.mxu1 %v5717_v0 }
 0x398   : > { %v6003_v19 = vrot.slane %v699_v5, %v5910_v39  ;;  %v706_v49 = vrot.slane %v698_v46, %v5910_v39 }
 0x39a   : > { %v730_v8 = vcombine.low %v6000_v6, %v6003_v19  ;;  %v731_v9 = vcombine.high %v6000_v6, %v6003_v19  ;;  %v714_v51 = vcombine.low %v690_v50, %v706_v49  ;;  %v715_v1 = vcombine.high %v690_v50, %v706_v49 }
 0x39c   : > { %v722_v52 = vrot.slane %v714_v51, %v5916_v47  ;;  %v729_v2 = vrot.slane %v715_v1, %v5916_v47  ;;  %v738_v4 = vrot.slane %v730_v8, %v5916_v47  ;;  %v745_v25 = vrot.slane %v731_v9, %v5916_v47 }
 0x39d   : > { %5304 = vmatmul.mubr.msk.bf16.vlgmr.msra.gmra.mrb[8].mxu1 %vm1238_vm2, %v816_v10 }
 0x39e   : > { %5308 = vmatpush3.bf16.msra.mxu1 %v1382_v11  ;;  %5309 = vmatprep.mubr.msk.bf16.mxu1 %vm5718_vm0, %v5717_v0  ;;  %v746_v53 = vcombine.high %v722_v52, %v5717_v0  ;;  %v750_v58 = vpack.c.bf16 %v722_v52, %v722_v52  ;;  %v752_v3 = vpack.c.bf16 %v729_v2, %v729_v2 }
 0x39f   : > { %5313 = vmatprep.subr.bf16.mxu1 %v5717_v0  ;;  %v754_v5 = vpack.c.bf16 %v738_v4, %v738_v4  ;;  %v747_v23 = vcombine.high %v729_v2, %v5717_v0  ;;  %v756_v7 = vpack.c.bf16 %v745_v25, %v745_v25  ;;  %v748_v10 = vcombine.high %v738_v4, %v5717_v0 }
 0x3a0   : > { %v751_v54 = vpack.c.bf16 %v746_v53, %v746_v53  ;;  %v749_v12 = vcombine.high %v745_v25, %v5717_v0 }
 0x3a1   : > { %v753_v24 = vpack.c.bf16 %v747_v23, %v747_v23  ;;  %v755_v11 = vpack.c.bf16 %v748_v10, %v748_v10 }
 0x3a2   : > { %v757_v8 = vpack.c.bf16 %v749_v12, %v749_v12 }
 0x3a5   : > { %5310 = vmatmul.mubr.msk.bf16.vlgmr.msra.gmra.mrb[12].mxu1 %vm1238_vm2, %v819_v14 }
 0x3a6   : > { %5315 = vmatprep.mubr.msk.bf16.mxu1 %vm5718_vm0, %v5717_v0 }
 0x460   : > { %v1280_v17 = vpop.f32.mrb[0].mxu1 }
 0x461   : > { %v1281_v18 = vadd.f32 %v1280_v17, %v372_v15  ;;  %v5293_v20 = vpop.f32.mrb[1].mxu1 }
 0x462   : > { %v1283_v21 = vpop.f32.mrb[2].mxu1 }
 0x463   : > { %v5294_v22 = vpop.f32.mrb[3].mxu1  ;;  %v6028_v26 = vadd.f32 %v5048_v16, %v1281_v18 }
 0x465   : > { %v1434_v27 = vsel %vm1238_vm2, %v6028_v26, -inf }
 0x466   : > { %1435 = vmax.xlane.f32.xlu0 %v1434_v27 }
 0x468   : > { %v1326_v29 = vpop.f32.mrb[4].mxu1 }
 0x469   : > { %v1327_v30 = vadd.f32 %v1326_v29, %v373_v28  ;;  %v5299_v31 = vpop.f32.mrb[5].mxu1 }
 0x46a   : > { %v1329_v32 = vpop.f32.mrb[6].mxu1 }
 0x46b   : > { %v5300_v33 = vpop.f32.mrb[7].mxu1  ;;  %v6035_v34 = vadd.f32 %v5048_v16, %v1327_v30 }
 0x46d   : > { %v1437_v35 = vsel %vm1238_vm2, %v6035_v34, -inf }
 0x46e   : > { %1438 = vmax.xlane.f32.xlu1 %v1437_v35 }
 0x470   : > { %v1372_v36 = vpop.f32.mrb[8].mxu1 }
 0x471   : > { %v5305_v37 = vpop.f32.mrb[9].mxu1  ;;  %v1373_v57 = vadd.f32 %v1372_v36, %v374_v55 }
 0x472   : > { %v1375_v38 = vpop.f32.mrb[10].mxu1 }
 0x473   : > { %v5306_v41 = vpop.f32.mrb[11].mxu1  ;;  %v6048_v56 = vadd.f32 %v5048_v16, %v1373_v57 }
 0x475   : > { %v1440_v61 = vsel %vm1238_vm2, %v6048_v56, -inf }
 0x478   : > { %v1418_v42 = vpop.f32.mrb[12].mxu1 }
 0x479   : > { %v5311_v43 = vpop.f32.mrb[13].mxu1  ;;  %v1419_v60 = vadd.f32 %v1418_v42, %v375_v59 }
 0x47a   : > { %v1421_v44 = vpop.f32.mrb[14].mxu1 }
 0x47b   : > { %v5312_v45 = vpop.f32.mrb[15].mxu1  ;;  %v6055_v62 = vadd.f32 %v5048_v16, %v1419_v60 }
 0x47d   : > { %v1443_v63 = vsel %vm1238_vm2, %v6055_v62, -inf }
 0x493   : > { %1498 = vxpose.xlu0.c.b16.start.end [1/1] (short) (narrow) %v751_v54, 16 }
 0x49b   : > { %1482 = vxpose.xlu1.c.b16.start.end [1/1] (short) (narrow) %v750_v58, 16 }
 0x4a0   : > { %1441 = vmax.xlane.f32.xlu0 %v1440_v61 }
 0x4a8   : > { %1444 = vmax.xlane.f32.xlu1 %v1443_v63 }
 0x4cd   : > { %1514 = vxpose.xlu0.c.b16.start.end [1/1] (short) (narrow) %v752_v3, 16 }
 0x4d1   : > { %1546 = vxpose.xlu0.c.b16.start.end [1/1] (short) (narrow) %v754_v5, 16 }
 0x4d5   : > { %1530 = vxpose.xlu1.c.b16.start.end [1/1] (short) (narrow) %v753_v24, 16  ;;  %1578 = vxpose.xlu0.c.b16.start.end [1/1] (short) (narrow) %v756_v7, 16 }
 0x4d9   : > { %1562 = vxpose.xlu1.c.b16.start.end [1/1] (short) (narrow) %v755_v11, 16 }
 0x4dd   : > { %1594 = vxpose.xlu1.c.b16.start.end [1/1] (short) (narrow) %v757_v8, 16 }
 0x4f3   : > { %v1436_v13 = vpop.xlane.xlu0 %1435 }
 0x4f4   : > { %v1446_v50 = vsub.f32 %v6028_v26, %v1436_v13 }
 0x4f6   : > { %v1450_v59 = vmul.f32 1.442695, %v1446_v50 }
 0x4f8   : > { %5607 = vpow2.f32 %v1450_v59 }
 0x4f9   : > { %v1506_v14 = vpop.trf.xlu0 }
 0x4fb   : > { %v1439_v15 = vpop.xlane.xlu1 %1438 }
 0x4fc   : > { %v1447_v54 = vsub.f32 %v6035_v34, %v1439_v15 }
 0x4fe   : > { %v1452_v1 = vmul.f32 1.442695, %v1447_v54 }
 0x500   : > { %5609 = vpow2.f32 %v1452_v1 }
 0x501   : > { %v1490_v17 = vpop.trf.xlu1 }
 0x502   : > { %v5608_v23 = vpop.eup %5607 }
 0x503   : > { %v1458_v25 = vsel %vm1238_vm2, %v5608_v23, 0.0 }
 0x52d   : > { %v1442_v16 = vpop.xlane.xlu0 %1441 }
 0x52e   : > { %v1448_v60 = vsub.f32 %v6048_v56, %v1442_v16  ;;  %v5610_v56 = vpop.eup %5609 }
 0x530   : > { %v1454_v4 = vmul.f32 1.442695, %v1448_v60 }
 0x532   : > { %5611 = vpow2.f32 %v1454_v4 }
 0x533   : > { %v1522_v6 = vpop.trf.xlu0 }
 0x535   : > { %v1445_v19 = vpop.xlane.xlu1 %1444 }
 0x536   : > { %v1449_v26 = vsub.f32 %v6055_v62, %v1445_v19  ;;  %v1461_v62 = vsel %vm1238_vm2, %v5610_v56, 0.0 }
 0x537   : > { %v1554_v9 = vpop.trf.xlu0 }
 0x538   : > { %v1610_v22 = vcombine.low %v1490_v17, %v1554_v9  ;;  %v1456_v5 = vmul.f32 1.442695, %v1449_v26 }
 0x53a   : > { %v1617_v29 = vrot.slane %v1610_v22, %v5910_v39  ;;  %5613 = vpow2.f32 %v1456_v5 }
 0x53b   : > { %v1538_v18 = vpop.trf.xlu1  ;;  %v1586_v20 = vpop.trf.xlu0 }
 0x53c   : > { %v1618_v21 = vcombine.low %v1522_v6, %v1586_v20  ;;  %v5612_v24 = vpop.eup %5611 }
 0x53d   : > { %v1464_v10 = vsel %vm1238_vm2, %v5612_v24, 0.0 }
 0x53e   : > { %v1625_v27 = vrot.slane %v1618_v21, %v5910_v39 }
 0x53f   : > { %v1570_v28 = vpop.trf.xlu1 }
 0x540   : > { %v1644_v30 = vcombine.low %v1506_v14, %v1570_v28  ;;  %v1626_v31 = vcombine.low %v1617_v29, %v1625_v27  ;;  %v1627_v43 = vcombine.high %v1617_v29, %v1625_v27 }
 0x542   : > { %v1651_v35 = vrot.slane %v1644_v30, %v5910_v39  ;;  %v1634_v37 = vrot.slane %v1626_v31, %v5916_v47  ;;  %v1641_v58 = vrot.slane %v1627_v43, %v5916_v47 }
 0x543   : > { %v1602_v32 = vpop.trf.xlu1 }
 0x544   : > { %v1652_v33 = vcombine.low %v1538_v18, %v1602_v32  ;;  %v1682_v44 = vshrl.u32 %v1634_v37, 16  ;;  %v1642_v48 = vcombine.high %v1634_v37, %v5725_v40  ;;  %v1698_v3 = vshrl.u32 %v1641_v58, 16  ;;  %v5614_v7 = vpop.eup %5613 }
 0x545   : > { %v1467_v11 = vsel %vm1238_vm2, %v5614_v7, 0.0  ;;  %v1643_v8 = vcombine.high %v1641_v58, %v5725_v40 }
 0x546   : > { %v1659_v36 = vrot.slane %v1652_v33, %v5910_v39  ;;  %v1690_v57 = vshrl.u32 %v1642_v48, 16 }
 0x547   : > { %v1706_v15 = vshrl.u32 %v1643_v8, 16 }
 0x548   : > { %v1660_v38 = vcombine.low %v1651_v35, %v1659_v36  ;;  %v1661_v41 = vcombine.high %v1651_v35, %v1659_v36 }
 0x54a   : > { %v1668_v42 = vrot.slane %v1660_v38, %v5916_v47  ;;  %v1675_v53 = vrot.slane %v1661_v41, %v5916_v47 }
 0x54c   : > { %v1680_v45 = vpack.i.b16 %v1668_v42, %v1634_v37  ;;  %v1683_v46 = vshrl.u32 %v1668_v42, 16  ;;  %v1676_v49 = vcombine.high %v1668_v42, %v5725_v40  ;;  %v1699_v63 = vshrl.u32 %v1675_v53, 16 }
 0x54d   : > { %v1696_v2 = vpack.i.b16 %v1675_v53, %v1641_v58  ;;  %v1677_v12 = vcombine.high %v1675_v53, %v5725_v40 }
 0x54e   : > { %1710 = vxpose.xlu0.c.b16.start.end [1/1] (short) (narrow) %v1680_v45, 16  ;;  %v1684_v51 = vpack.i.b16 %v1683_v46, %v1682_v44  ;;  %v1691_v52 = vshrl.u32 %v1676_v49, 16  ;;  %v1688_v55 = vpack.i.b16 %v1676_v49, %v1642_v48  ;;  %v1700_v34 = vpack.i.b16 %v1699_v63, %v1698_v3 }
 0x54f   : > { %v1707_v13 = vshrl.u32 %v1677_v12, 16  ;;  %v1704_v14 = vpack.i.b16 %v1677_v12, %v1643_v8 }
 0x550   : > { %1726 = vxpose.xlu1.c.b16.start.end [1/1] (short) (narrow) %v1684_v51, 16  ;;  %v1692_v61 = vpack.i.b16 %v1691_v52, %v1690_v57 }
 0x551   : > { %v1708_v16 = vpack.i.b16 %v1707_v13, %v1706_v15 }
 0x552   : > { %1742 = vxpose.xlu0.c.b16.start.end [1/1] (short) (narrow) %v1688_v55, 16 }
 0x554   : > { %1758 = vxpose.xlu1.c.b16.start.end [1/1] (short) (narrow) %v1692_v61, 16 }
 0x556   : > { %1774 = vxpose.xlu0.c.b16.start.end [1/1] (short) (narrow) %v1696_v2, 16 }
 0x558   : > { %1790 = vxpose.xlu1.c.b16.start.end [1/1] (short) (narrow) %v1700_v34, 16 }
 0x563   : > { %1459 = vadd.xlane.f32.xlu0 %v1458_v25 }
 0x565   : > { %1462 = vadd.xlane.f32.xlu1 %v1461_v62 }
 0x567   : > { %1465 = vadd.xlane.f32.xlu0 %v1464_v10 }
 0x569   : > { %1468 = vadd.xlane.f32.xlu1 %v1467_v11 }
 0x594   : > { %1806 = vxpose.xlu0.c.b16.start.end [1/1] (short) (narrow) %v1704_v14, 16 }
 0x596   : > { %1822 = vxpose.xlu1.c.b16.start.end [1/1] (short) (narrow) %v1708_v16, 16 }
 0x5b4   : > { %v1718_v17 = vpop.trf.xlu0 }
 0x5b6   : > { %v1734_v6 = vpop.trf.xlu1 }
 0x5b8   : > { %v1750_v19 = vpop.trf.xlu0 }
 0x5ba   : > { %v1766_v9 = vpop.trf.xlu1 }
 0x5bc   : > { %v1782_v18 = vpop.trf.xlu0 }
 0x5bd   : > { %v1838_v29 = vcombine.low %v1718_v17, %v1782_v18 }
 0x5be   : > { %v1798_v20 = vpop.trf.xlu1 }
 0x5bf   : > { %v1863_v32 = vcombine.low %v1734_v6, %v1798_v20  ;;  %v1845_v38 = vrot.slane %v1838_v29, %v5910_v39 }
 0x5c1   : > { %v1870_v46 = vrot.slane %v1863_v32, %v5910_v39 }
 0x5f0   : > { %v1460_v21 = vpop.xlane.xlu0 %1459 }
 0x5f1   : > { %5615 = vrcp.f32 %v1460_v21 }
 0x5f2   : > { %v1463_v22 = vpop.xlane.xlu1 %1462 }
 0x5f3   : > { %5617 = vrcp.f32 %v1463_v22 }
 0x5f4   : > { %v1466_v27 = vpop.xlane.xlu0 %1465 }
 0x5f5   : > { %5619 = vrcp.f32 %v1466_v27 }
 0x5f6   : > { %v1469_v28 = vpop.xlane.xlu1 %1468 }
 0x5f7   : > { %5621 = vrcp.f32 %v1469_v28 }
 0x5fa   : > { %v1814_v30 = vpop.trf.xlu0 }
 0x5fb   : > { %v5616_v31 = vpop.eup %5615  ;;  %v1846_v33 = vcombine.low %v1750_v19, %v1814_v30 }
 0x5fc   : > { %v1830_v35 = vpop.trf.xlu1  ;;  %v1474_v36 = vmul.f32 %v5616_v31, %v5608_v23 }
 0x5fd   : > { %v5618_v37 = vpop.eup %5617  ;;  %v1853_v41 = vrot.slane %v1846_v33, %v5910_v39  ;;  %v1871_v42 = vcombine.low %v1766_v9, %v1830_v35 }
 0x5fe   : > { %v1478_v43 = vpack.c.bf16 %v1474_v36, %v1474_v36  ;;  %v1475_v44 = vmul.f32 %v5618_v37, %v5610_v56 }
 0x5ff   : > { %v5620_v45 = vpop.eup %5619  ;;  %v1854_v48 = vcombine.low %v1845_v38, %v1853_v41  ;;  %v1878_v49 = vrot.slane %v1871_v42, %v5910_v39 }
 0x600   : > { %v1904_v50 = vsel %vm1238_vm2, %v1478_v43, 0  ;;  %v1479_v51 = vpack.c.bf16 %v1475_v44, %v1475_v44  ;;  %v1476_v52 = vmul.f32 %v5620_v45, %v5612_v24  ;;  %v5561_v44 = vld [vmem:[%s6647_s5] sm:$0xff]  }
 0x601   : > { %v5622_v53 = vpop.eup %5621  ;;  %v1861_v54 = vrot.slane %v1854_v48, %v5916_v47  ;;  %v1879_v55 = vcombine.low %v1870_v46, %v1878_v49  ;;  %5314 = vmatpush3.bf16.xpose.msra.mxu1 %v1904_v50 }
 0x602   : > { %v1950_v57 = vsel %vm1238_vm2, %v1479_v51, 0  ;;  %5325 = vmatprep.subr.bf16.mxu1 %v5717_v0  ;;  %v1477_v58 = vmul.f32 %v5622_v53, %v5614_v7  ;;  %v1480_v60 = vpack.c.bf16 %v1476_v52, %v1476_v52 }
 0x603   : > { %v1886_v59 = vrot.slane %v1879_v55, %v5916_v47  ;;  %5320 = vmatpush3.bf16.xpose.msra.mxu0 %v1950_v57  ;;  %v1891_v61 = vshrl.u32 %v1861_v54, 16  ;;  %v1862_v34 = vcombine.high %v1861_v54, %v5725_v40 }
 0x604   : > { %5331 = vmatprep.subr.bf16.mxu0 %v5717_v0  ;;  %v1481_v26 = vpack.c.bf16 %v1477_v58, %v1477_v58  ;;  %v1996_v4 = vsel %vm1238_vm2, %v1480_v60, 0 }
 0x605   : > { %v1890_v63 = vpack.i.b16 %v1886_v59, %v1861_v54  ;;  %v1892_v1 = vshrl.u32 %v1886_v59, 16  ;;  %v1887_v3 = vcombine.high %v1886_v59, %v5725_v40  ;;  %v1897_v56 = vshrl.u32 %v1862_v34, 16  ;;  %v5562_v54 = vld [vmem:[%s6647_s5 + $0x8] sm:$0xff]  }
 0x606   : > { %v2042_v5 = vsel %vm1238_vm2, %v1481_v26, 0 }
 0x607   : > { %v1893_v2 = vpack.i.b16 %v1892_v1, %v1891_v61  ;;  %v1898_v23 = vshrl.u32 %v1887_v3, 16  ;;  %v1896_v25 = vpack.i.b16 %v1887_v3, %v1862_v34 }
 0x608   : > { %5316 = vmatmul.mubr.msk.bf16.vlgmr.msra.gmra.mrb[16].mxu1 %vm1238_vm2, %v1890_v63 }
 0x609   : > { %5326 = vmatpush3.bf16.xpose.msra.mxu1 %v1996_v4  ;;  %5327 = vmatprep.mubr.msk.bf16.mxu1 %vm5718_vm0, %v5717_v0  ;;  %v1899_v24 = vpack.i.b16 %v1898_v23, %v1897_v56 }
 0x60a   : > { %5322 = vmatmul.mubr.msk.bf16.vlgmr.msra.gmra.mrb[4].mxu0 %vm1238_vm2, %v1893_v2  ;;  %5337 = vmatprep.subr.bf16.mxu1 %v5717_v0 }
 0x60b   : > { %5332 = vmatpush3.bf16.xpose.msra.mxu0 %v2042_v5  ;;  %5333 = vmatprep.mubr.msk.bf16.mxu0 %vm5718_vm0, %v5717_v0 }
 0x60c   : > { %5345 = vmatprep.subr.bf16.mxu0 %v5717_v0 }
 0x610   : > { %5328 = vmatmul.mubr.msk.bf16.vlgmr.msra.gmra.mrb[20].mxu1 %vm1238_vm2, %v1896_v25 }
 0x611   : > { %5341 = vmatprep.mubr.msk.bf16.mxu1 %vm5718_vm0, %v5717_v0  ;;  %5338 = vmatpush3.bf16.msra.mxu1 %v5561_v44 }
 0x612   : > { %5334 = vmatmul.mubr.msk.bf16.vlgmr.msra.gmra.mrb[8].mxu0 %vm1238_vm2, %v1899_v24  ;;  %5339 = vmatprep.subr.bf16.mxu1 %v5717_v0 }
 0x613   : > { %5361 = vmatprep.mubr.msk.bf16.mxu0 %vm5718_vm0, %v5717_v0 }
 0x615   : > { %5340 = vmatpush3.bf16.msra.mxu1 %v5562_v54 }
 0x616   : > { %5365 = vmatprep.subr.bf16.mxu1 %v5717_v0 }
 0x6db   : > { %v1940_v62 = vpop.f32.mrb[16].mxu1 }
 0x6dc   : > { %2084 = vxpose.xlu0.b32.start.end [1/1] (short) (narrow) %v1940_v62, 8  ;;  %v5317_v7 = vpop.f32.mrb[17].mxu1 }
 0x6dd   : > { %v1943_v10 = vpop.f32.mrb[18].mxu1  ;;  %v1986_v11 = vpop.f32.mrb[4].mxu0 }
 0x6de   : > { %v5318_v12 = vpop.f32.mrb[19].mxu1  ;;  %2116 = vxpose.xlu1.b32.start.end [1/1] (short) (narrow) %v1986_v11, 8  ;;  %v5323_v8 = vpop.f32.mrb[5].mxu0 }
 0x6df   : > { %v1989_v13 = vpop.f32.mrb[6].mxu0  ;;  %v5563_v8 = vld [vmem:[%s6649_s7] sm:$0xff]  }
 0x6e0   : > { %v5324_v14 = vpop.f32.mrb[7].mxu0  ;;  %5346 = vmatpush3.bf16.msra.mxu0 %v5563_v8  ;;  %v5564_v13 = vld [vmem:[%s6649_s7 + $0x8] sm:$0xff]  }
 0x6e1   : > { %5347 = vmatprep.subr.bf16.mxu0 %v5717_v0  ;;  %v5565_v14 = vld [vmem:[%s6649_s7 + $0x10] sm:$0xff]  }
 0x6e3   : > { %v2032_v15 = vpop.f32.mrb[20].mxu1 }
 0x6e4   : > { %2148 = vxpose.xlu0.b32.start.end [1/1] (short) (narrow) %v2032_v15, 8  ;;  %v5329_v16 = vpop.f32.mrb[21].mxu1  ;;  %5348 = vmatpush3.bf16.msra.mxu0 %v5564_v13 }
 0x6e5   : > { %v2035_v17 = vpop.f32.mrb[22].mxu1  ;;  %v2078_v6 = vpop.f32.mrb[8].mxu0  ;;  %5349 = vmatprep.subr.bf16.mxu0 %v5717_v0  ;;  %v5647_v16 = vld [vmem:[%s5851_s18] sm:$0xff] }
 0x6e6   : > { %v5330_v19 = vpop.f32.mrb[23].mxu1  ;;  %v5335_v9 = vpop.f32.mrb[9].mxu0 }
 0x6e7   : > { %v2081_v18 = vpop.f32.mrb[10].mxu0 }
 0x6e8   : > { %2180 = vxpose.xlu0.b32.start.end [1/1] (short) (narrow) %v2078_v6, 8  ;;  %v5336_v20 = vpop.f32.mrb[11].mxu0  ;;  %5350 = vmatpush3.bf16.msra.mxu0 %v5565_v14 }
 0x6e9   : > { %5351 = vmatprep.subr.bf16.mxu0 %v5717_v0  ;;  %v5566_v20 = vld [vmem:[%s6649_s7 + $0x18] sm:$0xff]  }
 0x6ec   : > { %5352 = vmatpush3.bf16.msra.mxu0 %v5566_v20 }
 0x6ed   : > { %5353 = vmatprep.subr.bf16.mxu0 %v5717_v0 }
 0x75c   : > { %v2100_v21 = vpop.trf.xlu0 }
 0x75e   : > { %v2132_v27 = vpop.trf.xlu1 }
 0x764   : > { %v2164_v22 = vpop.trf.xlu0 }
 0x765   : > { %v2212_v28 = vcombine.low %v2100_v21, %v2164_v22  ;;  %v2213_v29 = vcombine.high %v2100_v21, %v2164_v22  ;;  %v5567_v21 = vld [vmem:[%s6649_s7 + $0x20] sm:$0xff]   ;;  %v5568_v22 = vld [vmem:[%s6649_s7 + $0x28] sm:$0xff]  }
 0x766   : > { %5354 = vmatpush3.bf16.msra.mxu0 %v5567_v21 }
 0x767   : > { %v2220_v33 = vrot.slane %v2212_v28, %v5910_v39  ;;  %v2227_v35 = vrot.slane %v2213_v29, %v5910_v39  ;;  %5355 = vmatprep.subr.bf16.mxu0 %v5717_v0  ;;  %v5570_v28 = vld [vmem:[%s6649_s7 + $0x38] sm:$0xff]   ;;  %v5571_v29 = vld [vmem:[%s6650_s8] sm:$0xff]  }
 0x768   : > { %v2196_v30 = vpop.trf.xlu0 }
 0x769   : > { %v2228_v31 = vcombine.low %v2132_v27, %v2196_v30  ;;  %v2229_v32 = vcombine.high %v2132_v27, %v2196_v30  ;;  %v5569_v27 = vld [vmem:[%s6649_s7 + $0x30] sm:$0xff]   ;;  %v5572_v30 = vld [vmem:[%s6650_s8 + $0x8] sm:$0xff]  }
 0x76a   : > { %5356 = vmatpush3.bf16.msra.mxu0 %v5568_v22 }
 0x76b   : > { %v2236_v36 = vrot.slane %v2228_v31, %v5910_v39  ;;  %v2243_v37 = vrot.slane %v2229_v32, %v5910_v39  ;;  %5357 = vmatprep.subr.bf16.mxu0 %v5717_v0  ;;  %v5573_v31 = vld [vmem:[%s6650_s8 + $0x10] sm:$0xff]   ;;  %v5574_v32 = vld [vmem:[%s6650_s8 + $0x18] sm:$0xff]  }
 0x76d   : > { %v2244_v38 = vcombine.low %v2220_v33, %v2236_v36  ;;  %v2245_v41 = vcombine.high %v2220_v33, %v2236_v36  ;;  %v2260_v42 = vcombine.low %v2227_v35, %v2243_v37  ;;  %v2261_v43 = vcombine.high %v2227_v35, %v2243_v37  ;;  %v5575_v33 = vld [vmem:[%s6650_s8 + $0x20] sm:$0xff]   ;;  %v5576_v35 = vld [vmem:[%s6650_s8 + $0x28] sm:$0xff]   ;;  %v5577_v36 = vld [vmem:[%s6650_s8 + $0x30] sm:$0xff]  }
 0x76e   : > { %5358 = vmatpush3.bf16.msra.mxu0 %v5569_v27 }
 0x76f   : > { %v2252_v45 = vrot.slane %v2244_v38, %v5916_v47  ;;  %v2259_v46 = vrot.slane %v2245_v41, %v5916_v47  ;;  %v2268_v48 = vrot.slane %v2260_v42, %v5916_v47  ;;  %v2275_v49 = vrot.slane %v2261_v43, %v5916_v47  ;;  %5359 = vmatprep.subr.bf16.mxu0 %v5717_v0  ;;  %v5058_v43 = vld [vmem:[%s6648_s6] ss:$0 sm:$0xff] }
 0x771   : > { %v2280_v50 = vcombine.low %v2252_v45, %v2259_v46  ;;  %v5053_v51 = vcombine.high %v2252_v45, %v2259_v46  ;;  %v2296_v52 = vcombine.low %v2268_v48, %v2275_v49  ;;  %v5054_v53 = vcombine.high %v2268_v48, %v2275_v49  ;;  %v5578_v48 = vld [vmem:[%s6650_s8 + $0x38] sm:$0xff]  }
 0x772   : > { %5360 = vmatpush3.bf16.msra.mxu0 %v5570_v28 }
 0x773   : > { %v2287_v55 = vrot.slane %v2280_v50, %v5910_v39  ;;  %v2295_v57 = vrot.slane %v5053_v51, %v5910_v39  ;;  %v2303_v58 = vrot.slane %v2296_v52, %v5910_v39  ;;  %v2311_v59 = vrot.slane %v5054_v53, %v5910_v39  ;;  %5385 = vmatprep.subr.bf16.mxu0 %v5717_v0 }
 0x775   : > { %v2313_v60 = vcombine.high %v2287_v55, %v2295_v57  ;;  %v2329_v61 = vcombine.high %v2303_v58, %v2311_v59  ;;  %v2312_v63 = vcombine.low %v2287_v55, %v2295_v57  ;;  %v2328_v1 = vcombine.low %v2303_v58, %v2311_v59  ;;  %v5579_v55 = vld [vmem:[%s6646_s4 + $0x40] sm:$0xff]   ;;  %v5580_v57 = vld [vmem:[%s6646_s4 + $0x48] sm:$0xff]   ;;  %v5581_v58 = vld [vmem:[%s6646_s4 + $0x50] sm:$0xff]  }
 0x777   : > { %v2327_v26 = vrot.slane %v2313_v60, %v5916_v47  ;;  %v2343_v2 = vrot.slane %v2329_v61, %v5916_v47  ;;  %v2320_v3 = vrot.slane %v2312_v63, %v5916_v47  ;;  %v2336_v4 = vrot.slane %v2328_v1, %v5916_v47 }
 0x779   : > { %v2346_v34 = vcombine.low %v2327_v26, %v2343_v2  ;;  %v2345_v5 = vcombine.high %v2320_v3, %v2336_v4  ;;  %v2344_v23 = vcombine.low %v2320_v3, %v2336_v4  ;;  %v2347_v56 = vcombine.high %v2327_v26, %v2343_v2  ;;  %v5582_v2 = vld [vmem:[%s6646_s4 + $0x58] sm:$0xff]   ;;  %v5583_v3 = vld [vmem:[%s6646_s4 + $0x60] sm:$0xff]   ;;  %v5584_v4 = vld [vmem:[%s6646_s4 + $0x68] sm:$0xff]  }
 0x77b   : > { %2353 = vrot.lane.b32.xlu1 %v2346_v34, %s6657_s21  ;;  %2349 = vrot.lane.b32.xlu0 %v2345_v5, %s6656_s27  ;;  %v5585_v34 = vld [vmem:[%s6646_s4 + $0x70] sm:$0xff]   ;;  %v5586_v5 = vld [vmem:[%s6646_s4 + $0x78] sm:$0xff]   ;;  %s6668_s27 = smov 16   ;;  %s359_s21 = sand.u32 1, %s5707_s14  }
 0x77c   : > { %s5029_s18 = sshll.u32 %s359_s21, 3 }
 0x77f   : > { %2357 = vrot.lane.b32.xlu1 %v2347_v56, %s6655_s20  ;;  %s6669_s20 = smov 8  }
 0x7ed   : > { %v2354_v25 = vpop.permute.xlu1 %2353  ;;  %v2350_v24 = vpop.permute.xlu0 %2349 }
 0x7ee   : > { %v2360_v62 = vsel %vm1238_vm2, %v2344_v23, %v2350_v24 }
 0x7ef   : > { %v2362_v10 = vsel %vm2361_vm3, %v2360_v62, %v2354_v25  ;;  %v5076_v62 = vld [vmem:[%s6645_s3 + $0x1] ss:$0 sm:$0xff] }
 0x7f1   : > { %v2358_v7 = vpop.permute.xlu1 %2357 }
 0x7f2   : > { %v2364_v11 = vsel %vm2363_vm4, %v2362_v10, %v2358_v7 }
 0x7f3   : > { %v2365_v12 = vpack.c.bf16 %v2364_v11, %v2364_v11 }
 0x7f5   : > { %5342 = vmatmul.mubr.msk.bf16.vlgmr.msra.gmra.mrb[24].mxu1 %vm2382_vm5, %v2365_v12 }
 0x7f6   : > { %5381 = vmatprep.mubr.msk.bf16.mxu1 %vm5718_vm0, %v5717_v0  ;;  %5366 = vmatpush3.bf16.msra.mxu1 %v5571_v29 }
 0x7f7   : > { %5367 = vmatprep.subr.bf16.mxu1 %v5717_v0 }
 0x7fa   : > { %5368 = vmatpush3.bf16.msra.mxu1 %v5572_v30 }
 0x7fb   : > { %5369 = vmatprep.subr.bf16.mxu1 %v5717_v0 }
 0x7fe   : > { %5370 = vmatpush3.bf16.msra.mxu1 %v5573_v31 }
 0x7ff   : > { %5371 = vmatprep.subr.bf16.mxu1 %v5717_v0 }
 0x802   : > { %5372 = vmatpush3.bf16.msra.mxu1 %v5574_v32 }
 0x803   : > { %5373 = vmatprep.subr.bf16.mxu1 %v5717_v0 }
 0x806   : > { %5374 = vmatpush3.bf16.msra.mxu1 %v5575_v33 }
 0x807   : > { %5375 = vmatprep.subr.bf16.mxu1 %v5717_v0 }
 0x80a   : > { %5376 = vmatpush3.bf16.msra.mxu1 %v5576_v35 }
 0x80b   : > { %5377 = vmatprep.subr.bf16.mxu1 %v5717_v0 }
 0x80e   : > { %5378 = vmatpush3.bf16.msra.mxu1 %v5577_v36 }
 0x80f   : > { %5379 = vmatprep.subr.bf16.mxu1 %v5717_v0 }
 0x812   : > { %5380 = vmatpush3.bf16.msra.mxu1 %v5578_v48 }
 0x813   : > { %5405 = vmatprep.subr.bf16.mxu1 %v5717_v0 }
 0x8c8   : > { %v2420_v15 = vpop.f32.mrb[24].mxu1 }
 0x8c9   : > { %v6165_v17 = vadd.f32 %v5647_v16, %v2420_v15  ;;  %v5343_v6 = vpop.f32.mrb[25].mxu1 }
 0x8ca   : > { %v2423_v19 = vpop.f32.mrb[26].mxu1 }
 0x8cb   : > { %v5344_v9 = vpop.f32.mrb[27].mxu1  ;;  %v2427_v18 = vmul.f32 %v6165_v17, %v6165_v17 }
 0x8cd   : > { %2428 = vadd.xlane.f32.xlu1 %v2427_v18 }
 0x95a   : > { %v2429_v37 = vpop.xlane.xlu1 %2428 }
 0x95b   : > { %v2430_v38 = vmul.f32 0.03125, %v2429_v37 }
 0x95d   : > { %v2431_v41 = vadd.f32 1e-06, %v2430_v38 }
 0x95f   : > { %5623 = vrsqrt.f32 %v2431_v41 }
 0x969   : > { %v5624_v42 = vpop.eup %5623 }
 0x96a   : > { %v2433_v44 = vmul.f32 %v5624_v42, %v6165_v17 }
 0x96c   : > { %v2441_v45 = vmul.f32 %v5058_v43, %v2433_v44 }
 0x96e   : > { %v2442_v46 = vpack.c.bf16 %v2441_v45, %v2441_v45 }
 0x970   : > { %5362 = vmatmul.mubr.bf16.vlgmr.msra.gmra.mrb[12].mxu0 %v2442_v46 }
 0x971   : > { %5401 = vmatprep.mubr.msk.bf16.mxu0 %vm5718_vm0, %v5717_v0  ;;  %5386 = vmatpush3.bf16.msra.mxu0 %v5579_v55 }
 0x972   : > { %5387 = vmatprep.subr.bf16.mxu0 %v5717_v0 }
 0x975   : > { %5388 = vmatpush3.bf16.msra.mxu0 %v5580_v57 }
 0x976   : > { %5389 = vmatprep.subr.bf16.mxu0 %v5717_v0 }
 0x979   : > { %5390 = vmatpush3.bf16.msra.mxu0 %v5581_v58 }
 0x97a   : > { %5391 = vmatprep.subr.bf16.mxu0 %v5717_v0 }
 0x97d   : > { %5392 = vmatpush3.bf16.msra.mxu0 %v5582_v2 }
 0x97e   : > { %5393 = vmatprep.subr.bf16.mxu0 %v5717_v0 }
 0x981   : > { %5394 = vmatpush3.bf16.msra.mxu0 %v5583_v3 }
 0x982   : > { %5395 = vmatprep.subr.bf16.mxu0 %v5717_v0 }
 0x985   : > { %5396 = vmatpush3.bf16.msra.mxu0 %v5584_v4 }
 0x986   : > { %5397 = vmatprep.subr.bf16.mxu0 %v5717_v0 }
 0x989   : > { %5398 = vmatpush3.bf16.msra.mxu0 %v5585_v34 }
 0x98a   : > { %5399 = vmatprep.subr.bf16.mxu0 %v5717_v0 }
 0x98d   : > { %5400 = vmatpush3.bf16.msra.mxu0 %v5586_v5 }
 0x98e   : > { %5429 = vmatprep.subr.bf16.mxu0 %v5717_v0 }
 0xa43   : > { %v2541_v49 = vpop.f32.mrb[12].mxu0 }
 0xa44   : > { %v2547_v50 = vmax.f32 %v2541_v49, 0.0  ;;  %v5363_v51 = vpop.f32.mrb[13].mxu0 }
 0xa45   : > { %v2544_v52 = vpop.f32.mrb[14].mxu0 }
 0xa46   : > { %v2548_v53 = vpack.c.bf16 %v2547_v50, %v2547_v50  ;;  %v5364_v54 = vpop.f32.mrb[15].mxu0 }
 0xa48   : > { %5382 = vmatmul.mubr.bf16.vlgmr.msra.gmra.mrb[28].mxu1 %v2548_v53 }
 0xa49   : > { %5407 = vmatprep.mubr.msk.bf16.mxu1 %vm5718_vm0, %v5717_v0 }
 0xb1b   : > { %v2647_v59 = vpop.f32.mrb[28].mxu1 }
 0xb1c   : > { %v6242_v60 = vadd.f32 %v2647_v59, %v6165_v17  ;;  %v5383_v61 = vpop.f32.mrb[29].mxu1 }
 0xb1d   : > { %v2650_v63 = vpop.f32.mrb[30].mxu1 }
 0xb1e   : > { %v5384_v1 = vpop.f32.mrb[31].mxu1  ;;  %v2654_v26 = vmul.f32 %v6242_v60, %v6242_v60 }
 0xb20   : > { %2655 = vadd.xlane.f32.xlu0 %v2654_v26 }
 0xbad   : > { %v2656_v23 = vpop.xlane.xlu0 %2655 }
 0xbae   : > { %v2657_v56 = vmul.f32 0.03125, %v2656_v23 }
 0xbb0   : > { %v2658_v25 = vadd.f32 1e-06, %v2657_v56 }
 0xbb2   : > { %5625 = vrsqrt.f32 %v2658_v25 }
 0xbbc   : > { %v5626_v24 = vpop.eup %5625 }
 0xbbd   : > { %v2660_v7 = vmul.f32 %v5626_v24, %v6242_v60 }
 0xbbf   : > { %v2669_v10 = vmul.f32 %v5076_v62, %v2660_v7 }
 0xbc1   : > { %v2670_v11 = vpack.c.bf16 %v2669_v10, %v2669_v10 }
 0xbc3   : > { %5402 = vmatmul.mubr.bf16.vlgmr.msra.gmra.mrb[16].mxu0 %v2670_v11 }
 0xbc4   : > { %5431 = vmatprep.mubr.msk.bf16.mxu0 %vm5718_vm0, %v5717_v0 }
 0xc96   : > { %v6272_v12 = vpop.f32.mrb[16].mxu0 }
 0xc97   : > { %2780 = vrot.lane.b32.xlu0 %v6272_v12, %s5719_s29  ;;  %2777 = vrot.lane.b32.xlu1 %v6272_v12, %s5720_s30  ;;  %v5403_v8 = vpop.f32.mrb[17].mxu0  ;;  %s6667_s29 = smov 64  }
 0xc98   : > { %v2773_v13 = vpop.f32.mrb[18].mxu0 }
 0xc99   : > { %v5404_v14 = vpop.f32.mrb[19].mxu0 }
 0xc9b   : > { %2783 = vrot.lane.b32.xlu1 %v6272_v12, %s6665_s25 }
 0xc9f   : > { %2862 = vrot.lane.b32.xlu1 %v6272_v12, %s6666_s28 }
 0xd09   : > { %v6282_v15 = vpop.permute.xlu0 %2780  ;;  %v6284_v16 = vpop.permute.xlu1 %2777 }
 0xd0a   : > { %2866 = vrot.lane.b32.xlu1 %v6282_v15, %s6666_s28  ;;  %2864 = vrot.lane.b32.xlu0 %v6284_v16, %s6666_s28 }
 0xd0d   : > { %v6290_v17 = vpop.permute.xlu1 %2783 }
 0xd0e   : > { %2868 = vrot.lane.b32.xlu0 %v6290_v17, %s6666_s28  ;;  %s5174_s28 = sshll.u32 %s5807_s17, 7  ;;  %s5730_s17 = smov [#allocation2]  }
 0xd11   : > { %v2863_v6 = vpop.permute.xlu1 %2862 }
 0xd7c   : > { %v2865_v19 = vpop.permute.xlu0 %2864  ;;  %v2867_v9 = vpop.permute.xlu1 %2866 }
 0xd7d   : > { %v2874_v18 = vcombine.low %v2863_v6, %v2867_v9  ;;  %v2875_v20 = vcombine.high %v2863_v6, %v2867_v9 }
 0xd7f   : > { %v2882_v28 = vrot.slane %v2874_v18, %v5910_v39  ;;  %v2889_v29 = vrot.slane %v2875_v20, %v5910_v39 }
 0xd80   : > { %v2869_v21 = vpop.permute.xlu0 %2868 }
 0xd81   : > { %v2890_v22 = vcombine.low %v2865_v19, %v2869_v21  ;;  %v2891_v27 = vcombine.high %v2865_v19, %v2869_v21 }
 0xd83   : > { %v2898_v30 = vrot.slane %v2890_v22, %v5910_v39  ;;  %v2905_v31 = vrot.slane %v2891_v27, %v5910_v39 }
 0xd85   : > { %v2906_v32 = vcombine.low %v2882_v28, %v2898_v30  ;;  %v2907_v33 = vcombine.high %v2882_v28, %v2898_v30  ;;  %v2922_v35 = vcombine.low %v2889_v29, %v2905_v31  ;;  %v2923_v38 = vcombine.high %v2889_v29, %v2905_v31 }
 0xd87   : > { %v2921_v36 = vrot.slane %v2907_v33, %v5916_v47  ;;  %v2914_v37 = vrot.slane %v2906_v32, %v5916_v47  ;;  %v2930_v43 = vrot.slane %v2922_v35, %v5916_v47  ;;  %v2937_v45 = vrot.slane %v2923_v38, %v5916_v47 }
 0xd89   : > { %v2944_v41 = vpack.c.bf16 %v2921_v36, %v2921_v36  ;;  %v2942_v42 = vpack.c.bf16 %v2914_v37, %v2914_v37  ;;  %v2939_v44 = vcombine.high %v2921_v36, %v5717_v0  ;;  %v2946_v46 = vpack.c.bf16 %v2930_v43, %v2930_v43 }
 0xd8a   : > { %v2940_v49 = vcombine.high %v2930_v43, %v5717_v0  ;;  %v2938_v50 = vcombine.high %v2914_v37, %v5717_v0  ;;  %v2941_v53 = vcombine.high %v2937_v45, %v5717_v0  ;;  %v2948_v55 = vpack.c.bf16 %v2937_v45, %v2937_v45 }
 0xd8b   : > { %3132 = vxpose.xlu0.c.b16.start.end [1/1] (short) (narrow) %v2944_v41, 16  ;;  %3100 = vxpose.xlu1.c.b16.start.end [1/1] (short) (narrow) %v2942_v42, 16  ;;  %v2945_v48 = vpack.c.bf16 %v2939_v44, %v2939_v44  ;;  %v2802_v44 = vcombine.low %v6284_v16, %v6290_v17  ;;  %v2803_v45 = vcombine.high %v6284_v16, %v6290_v17 }
 0xd8c   : > { %v2947_v51 = vpack.c.bf16 %v2940_v49, %v2940_v49  ;;  %v2943_v52 = vpack.c.bf16 %v2938_v50, %v2938_v50  ;;  %v2949_v54 = vpack.c.bf16 %v2941_v53, %v2941_v53 }
 0xd8d   : > { %v2810_v49 = vrot.slane %v2802_v44, %v5910_v39  ;;  %v2817_v50 = vrot.slane %v2803_v45, %v5910_v39 }
 0xd8f   : > { %3164 = vxpose.xlu0.c.b16.start.end [1/1] (short) (narrow) %v2946_v46, 16  ;;  %3148 = vxpose.xlu1.c.b16.start.end [1/1] (short) (narrow) %v2945_v48, 16  ;;  %v2786_v46 = vcombine.low %v6272_v12, %v6282_v15  ;;  %v2787_v48 = vcombine.high %v6272_v12, %v6282_v15 }
 0xd93   : > { %3180 = vxpose.xlu1.c.b16.start.end [1/1] (short) (narrow) %v2947_v51, 16  ;;  %3116 = vxpose.xlu0.c.b16.start.end [1/1] (short) (narrow) %v2943_v52, 16  ;;  %v2794_v51 = vrot.slane %v2786_v46, %v5910_v39  ;;  %v2801_v52 = vrot.slane %v2787_v48, %v5910_v39 }
 0xd95   : > { %v2818_v53 = vcombine.low %v2794_v51, %v2810_v49 }
 0xd97   : > { %3212 = vxpose.xlu1.c.b16.start.end [1/1] (short) (narrow) %v2949_v54, 16  ;;  %3196 = vxpose.xlu0.c.b16.start.end [1/1] (short) (narrow) %v2948_v55, 16  ;;  %v2834_v54 = vcombine.low %v2801_v52, %v2817_v50  ;;  %v2819_v55 = vcombine.high %v2794_v51, %v2810_v49 }
 0xdf1   : > { %v3140_v57 = vpop.trf.xlu0  ;;  %v3108_v58 = vpop.trf.xlu1 }
 0xdf5   : > { %v3172_v59 = vpop.trf.xlu0  ;;  %v3156_v61 = vpop.trf.xlu1 }
 0xdf6   : > { %v3228_v26 = vcombine.low %v3108_v58, %v3172_v59 }
 0xdf8   : > { %v3235_v23 = vrot.slane %v3228_v26, %v5910_v39 }
 0xdf9   : > { %v3188_v63 = vpop.trf.xlu1  ;;  %v3124_v1 = vpop.trf.xlu0 }
 0xdfa   : > { %v3262_v2 = vcombine.low %v3124_v1, %v3188_v63 }
 0xdfc   : > { %v3269_v56 = vrot.slane %v3262_v2, %v5910_v39 }
 0xdfd   : > { %v3220_v3 = vpop.trf.xlu1  ;;  %v3204_v4 = vpop.trf.xlu0 }
 0xdfe   : > { %v3270_v34 = vcombine.low %v3156_v61, %v3220_v3  ;;  %v3236_v5 = vcombine.low %v3140_v57, %v3204_v4  ;;  %v2835_v57 = vcombine.high %v2801_v52, %v2817_v50 }
 0xe00   : > { %v3277_v25 = vrot.slane %v3270_v34, %v5910_v39  ;;  %v3243_v24 = vrot.slane %v3236_v5, %v5910_v39 }
 0xe02   : > { %v3278_v62 = vcombine.low %v3269_v56, %v3277_v25  ;;  %v3279_v7 = vcombine.high %v3269_v56, %v3277_v25  ;;  %v3244_v10 = vcombine.low %v3235_v23, %v3243_v24  ;;  %v3245_v11 = vcombine.high %v3235_v23, %v3243_v24 }
 0xe04   : > { %v3252_v8 = vrot.slane %v3244_v10, %v5916_v47  ;;  %v3286_v13 = vrot.slane %v3278_v62, %v5916_v47  ;;  %v3259_v14 = vrot.slane %v3245_v11, %v5916_v47  ;;  %v3293_v6 = vrot.slane %v3279_v7, %v5916_v47 }
 0xe06   : > { %v3298_v19 = vpack.i.b16 %v3286_v13, %v3252_v8  ;;  %v3300_v9 = vshrl.u32 %v3252_v8, 16  ;;  %v3301_v18 = vshrl.u32 %v3286_v13, 16  ;;  %v3316_v20 = vshrl.u32 %v3259_v14, 16 }
 0xe07   : > { %v3317_v22 = vshrl.u32 %v3293_v6, 16  ;;  %v3260_v27 = vcombine.high %v3252_v8, %v5725_v40  ;;  %v3294_v28 = vcombine.high %v3286_v13, %v5725_v40  ;;  %v3314_v29 = vpack.i.b16 %v3293_v6, %v3259_v14 }
 0xe08   : > { %3328 = vxpose.xlu0.c.b16.start.end [1/1] (short) (narrow) %v3298_v19, 16  ;;  %v3302_v21 = vpack.i.b16 %v3301_v18, %v3300_v9  ;;  %v3261_v30 = vcombine.high %v3259_v14, %v5725_v40  ;;  %v3295_v35 = vcombine.high %v3293_v6, %v5725_v40 }
 0xe09   : > { %v3318_v31 = vpack.i.b16 %v3317_v22, %v3316_v20  ;;  %v3308_v32 = vshrl.u32 %v3260_v27, 16  ;;  %v3309_v33 = vshrl.u32 %v3294_v28, 16  ;;  %v3306_v36 = vpack.i.b16 %v3294_v28, %v3260_v27 }
 0xe0a   : > { %3344 = vxpose.xlu1.c.b16.start.end [1/1] (short) (narrow) %v3302_v21, 16  ;;  %v3324_v38 = vshrl.u32 %v3261_v30, 16  ;;  %v3325_v41 = vshrl.u32 %v3295_v35, 16  ;;  %v3322_v42 = vpack.i.b16 %v3295_v35, %v3261_v30 }
 0xe0b   : > { %v3310_v37 = vpack.i.b16 %v3309_v33, %v3308_v32 }
 0xe0c   : > { %3392 = vxpose.xlu0.c.b16.start.end [1/1] (short) (narrow) %v3314_v29, 16  ;;  %v3326_v43 = vpack.i.b16 %v3325_v41, %v3324_v38 }
 0xe0e   : > { %3408 = vxpose.xlu1.c.b16.start.end [1/1] (short) (narrow) %v3318_v31, 16 }
 0xe10   : > { %3360 = vxpose.xlu0.c.b16.start.end [1/1] (short) (narrow) %v3306_v36, 16 }
 0xe12   : > { %3376 = vxpose.xlu1.c.b16.start.end [1/1] (short) (narrow) %v3310_v37, 16 }
 0xe14   : > { %3424 = vxpose.xlu0.c.b16.start.end [1/1] (short) (narrow) %v3322_v42, 16 }
 0xe16   : > { %3440 = vxpose.xlu1.c.b16.start.end [1/1] (short) (narrow) %v3326_v43, 16 }
 0xe1a   : > { %2952 = vrot.lane.b32.xlu1 %v6284_v16, %s6667_s29  ;;  %v2826_v16 = vrot.slane %v2818_v53, %v5916_v47 }
 0xe1c   : > { %v2850_v63 = vcombine.high %v2826_v16, %v5717_v0 }
 0xe1d   : > { %2950 = vrot.lane.b32.xlu0 %v6272_v12, %s6667_s29  ;;  %v2833_v12 = vrot.slane %v2819_v55, %v5916_v47 }
 0xe1e   : > { %2954 = vrot.lane.b32.xlu1 %v6282_v15, %s6667_s29  ;;  %v2849_v15 = vrot.slane %v2835_v57, %v5916_v47 }
 0xe1f   : > { %v2851_v2 = vcombine.high %v2833_v12, %v5717_v0 }
 0xe20   : > { %v2853_v3 = vcombine.high %v2849_v15, %v5717_v0  ;;  %v5102_v62 = vpack.c.bf16 %v2849_v15, %v2833_v12 }
 0xe21   : > { %2956 = vrot.lane.b32.xlu0 %v6290_v17, %s6667_s29  ;;  %v2842_v17 = vrot.slane %v2834_v54, %v5916_v47  ;;  %s361_s29 = scalar_lea.vmem [#allocation2], %s5029_s18  ;;  %s5657_s18 = sshll.u32 %s5730_s17, 4  ;;  %s5658_s18 = int_to_ptr.vmem [resolvable:$false] %s5657_s18 }
 0xe22   : > { %v5104_v23 = vpack.c.bf16 %v2853_v3, %v2851_v2  ;;  %v3053_v18 = vrot.slane %v5102_v62, %v5910_v39  ;;  %s4957_s30 = sshll.u32 %s361_s29, 4  ;;  %s5659_s11 = scalar_lea.vmem %s5658_s18, 256  ;;  %s6602_s30 = int_to_ptr.vmem [resolvable:$true] %s4957_s30 }
 0xe23   : > { %v2852_v1 = vcombine.high %v2842_v17, %v5717_v0  ;;  %v5101_v25 = vpack.c.bf16 %v2842_v17, %v2826_v16  ;;  %s5653_s0 = scalar_lea.vmem %s6602_s30, 128  ;;  %p5660_p0 = scmp.lt.s32.totalorder %s6602_s30, %s5658_s18 }
 0xe24   : > { %v3078_v13 = vrot.slane %v5104_v23, %v5910_v39  ;;  %p5654_p11 = scmp.ne.s32.totalorder %s6602_s30, %s5653_s0  ;;  %p5661_p1 = scmp.lt.s32.totalorder %s5659_s11, %s5653_s0 }
 0xe25   : > { %v5103_v34 = vpack.c.bf16 %v2852_v1, %v2850_v63  ;;  %v3045_v9 = vrot.slane %v5101_v25, %v5910_v39 }
 0xe26   : > { %p5655_p12 = pnand %p5654_p11, %p5824_p5  ;;  %p5662_p2 = por %p5661_p1, %p5660_p0 }
 0xe27   : > { %v3070_v11 = vrot.slane %v5103_v34, %v5910_v39  ;;  %v3054_v30 = vcombine.low %v3045_v9, %v3053_v18 }
 0xe28   : > { %p5656_p13 = pneg %p5655_p12 }
 0xe29   : > { %v3079_v29 = vcombine.low %v3070_v11, %v3078_v13  ;;  %v3061_v38 = vrot.slane %v3054_v30, %v5916_v47 }
 0xe2a   : > { %p5663_p3 = pnand %p5662_p2, %p5656_p13 }
 0xe2b   : > { %v3086_v33 = vrot.slane %v3079_v29, %v5916_v47  ;;  %v3091_v50 = vshrl.u32 %v3061_v38, 16 }
 0xe2d   : > { %v3090_v42 = vpack.i.b16 %v3086_v33, %v3061_v38  ;;  %v3092_v46 = vshrl.u32 %v3086_v33, 16  ;;  %v3087_v17 = vcombine.high %v3086_v33, %v5725_v40 }
 0xe2f   : > { %v3093_v53 = vpack.i.b16 %v3092_v46, %v3091_v50  ;;  %v5651_v46 = vld [vmem:[%s6643_s1 + $0x10] sm:$0xff] }
 0xe6e   : > { %v3336_v58 = vpop.trf.xlu0 }
 0xe70   : > { %v3352_v59 = vpop.trf.xlu1 }
 0xe72   : > { %v3400_v61 = vpop.trf.xlu0 }
 0xe73   : > { %v3456_v56 = vcombine.low %v3336_v58, %v3400_v61  ;;  %v3062_v61 = vcombine.high %v3061_v38, %v5725_v40 }
 0xe74   : > { %v3416_v26 = vpop.trf.xlu1 }
 0xe75   : > { %v3481_v7 = vcombine.low %v3352_v59, %v3416_v26  ;;  %v3463_v14 = vrot.slane %v3456_v56, %v5910_v39  ;;  %v3096_v2 = vpack.i.b16 %v3087_v17, %v3062_v61  ;;  %v3097_v34 = vshrl.u32 %v3062_v61, 16  ;;  %v5648_v56 = vld [vmem:[%s6643_s1] sm:$0xff] }
 0xe76   : > { %v3368_v4 = vpop.trf.xlu0 }
 0xe77   : > { %v3488_v20 = vrot.slane %v3481_v7, %v5910_v39 }
 0xe78   : > { %v3384_v5 = vpop.trf.xlu1 }
 0xe7a   : > { %v3432_v24 = vpop.trf.xlu0 }
 0xe7b   : > { %v3464_v10 = vcombine.low %v3368_v4, %v3432_v24  ;;  %v3098_v4 = vshrl.u32 %v3087_v17, 16 }
 0xe7c   : > { %v3448_v8 = vpop.trf.xlu1 }
 0xe7d   : > { %v3471_v6 = vrot.slane %v3464_v10, %v5910_v39  ;;  %v3489_v19 = vcombine.low %v3384_v5, %v3448_v8  ;;  %v3099_v5 = vpack.i.b16 %v3098_v4, %v3097_v34  ;;  %v5649_v10 = vld [vmem:[%s6022_s26] ss:$0 sm:$0xff]  ;;  %s4944_s26 = scalar_lea.sflag [#allocation3], %s359_s21 }
 0xe7f   : > { %v3472_v21 = vcombine.low %v3463_v14, %v3471_v6  ;;  %v3496_v22 = vrot.slane %v3489_v19, %v5910_v39  ;;  %v5650_v14 = vld [vmem:[%s6643_s1 + $0x8] sm:$0xff] }
 0xe81   : > { %v3479_v27 = vrot.slane %v3472_v21, %v5916_v47  ;;  %v3497_v28 = vcombine.low %v3488_v20, %v3496_v22 }
 0xe83   : > { %v3504_v31 = vrot.slane %v3497_v28, %v5916_v47  ;;  %v3509_v35 = vshrl.u32 %v3479_v27, 16  ;;  %v3480_v48 = vcombine.high %v3479_v27, %v5725_v40 }
 0xe85   : > { %v3508_v32 = vpack.i.b16 %v3504_v31, %v3479_v27  ;;  %v3510_v36 = vshrl.u32 %v3504_v31, 16  ;;  %v3505_v44 = vcombine.high %v3504_v31, %v5725_v40  ;;  %v3515_v59 = vshrl.u32 %v3480_v48, 16 }
 0xe87   : > { %v3522_v37 = vsel %vm1242_vm1, %v3508_v32, 0  ;;  %v3511_v41 = vpack.i.b16 %v3510_v36, %v3509_v35  ;;  %v3514_v51 = vpack.i.b16 %v3505_v44, %v3480_v48  ;;  %v3516_v58 = vshrl.u32 %v3505_v44, 16 }
 0xe88   : > { %5406 = vmatpush3.bf16.msra.mxu1 %v3522_v37 }
 0xe89   : > { %5411 = vmatprep.subr.bf16.mxu1 %v5717_v0  ;;  %v3568_v43 = vsel %vm1242_vm1, %v3511_v41, 0  ;;  %v3614_v55 = vsel %vm1242_vm1, %v3514_v51, 0  ;;  %v3517_v63 = vpack.i.b16 %v3516_v58, %v3515_v59 }
 0xe8b   : > { %5408 = vmatmul.mubr.msk.bf16.vlgmr.msra.gmra.mrb[32].mxu1 %vm1238_vm2, %v3090_v42  ;;  %v3660_v3 = vsel %vm1242_vm1, %v3517_v63, 0 }
 0xe8c   : > { %v6363_v45 = vpop.permute.xlu1 %2952  ;;  %5412 = vmatpush3.bf16.msra.mxu1 %v3568_v43  ;;  %5413 = vmatprep.mubr.msk.bf16.mxu1 %vm5718_vm0, %v5717_v0 }
 0xe8d   : > { %5417 = vmatprep.subr.bf16.mxu1 %v5717_v0 }
 0xe8f   : > { %v6369_v49 = vpop.permute.xlu0 %2950 }
 0xe90   : > { %v2955_v52 = vpop.permute.xlu1 %2954 }
 0xe91   : > { %v2963_v54 = vcombine.high %v6369_v49, %v2955_v52  ;;  %v2962_v36 = vcombine.low %v6369_v49, %v2955_v52  ;;  %v5652_v49 = vld [vmem:[%s6643_s1 + $0x18] sm:$0xff] }
 0xe93   : > { %5414 = vmatmul.mubr.msk.bf16.vlgmr.msra.gmra.mrb[36].mxu1 %vm1238_vm2, %v3093_v53  ;;  %v2957_v57 = vpop.permute.xlu0 %2956  ;;  %v6380_v12 = vrot.slane %v2963_v54, %v5910_v39  ;;  %v2970_v38 = vrot.slane %v2962_v36, %v5910_v39 }
 0xe94   : > { %5418 = vmatpush3.bf16.msra.mxu1 %v3614_v55  ;;  %v2979_v16 = vcombine.high %v6363_v45, %v2957_v57  ;;  %5419 = vmatprep.mubr.msk.bf16.mxu1 %vm5718_vm0, %v5717_v0  ;;  %v2978_v35 = vcombine.low %v6363_v45, %v2957_v57 }
 0xe95   : > { %5423 = vmatprep.subr.bf16.mxu1 %v5717_v0 }
 0xe96   : > { %v6383_v15 = vrot.slane %v2979_v16, %v5910_v39  ;;  %v2986_v37 = vrot.slane %v2978_v35, %v5910_v39 }
 0xe98   : > { %v3010_v1 = vcombine.low %v6380_v12, %v6383_v15  ;;  %v3011_v26 = vcombine.high %v6380_v12, %v6383_v15  ;;  %v2994_v41 = vcombine.low %v2970_v38, %v2986_v37  ;;  %v2995_v55 = vcombine.high %v2970_v38, %v2986_v37 }
 0xe9a   : > { %v3002_v42 = vrot.slane %v2994_v41, %v5916_v47  ;;  %v3009_v57 = vrot.slane %v2995_v55, %v5916_v47  ;;  %v3018_v16 = vrot.slane %v3010_v1, %v5916_v47  ;;  %v3025_v61 = vrot.slane %v3011_v26, %v5916_v47 }
 0xe9b   : > { %5420 = vmatmul.mubr.msk.bf16.vlgmr.msra.gmra.mrb[40].mxu1 %vm1238_vm2, %v3096_v2 }
 0xe9c   : > { %5424 = vmatpush3.bf16.msra.mxu1 %v3660_v3  ;;  %5425 = vmatprep.mubr.msk.bf16.mxu1 %vm5718_vm0, %v5717_v0  ;;  %v3026_v43 = vcombine.high %v3002_v42, %v5717_v0  ;;  %v3030_v50 = vpack.c.bf16 %v3002_v42, %v3002_v42  ;;  %v3032_v58 = vpack.c.bf16 %v3009_v57, %v3009_v57 }
 0xe9d   : > { %5435 = vmatprep.subr.bf16.mxu1 %v5717_v0  ;;  %v3034_v17 = vpack.c.bf16 %v3018_v16, %v3018_v16  ;;  %v3027_v59 = vcombine.high %v3009_v57, %v5717_v0  ;;  %v3036_v2 = vpack.c.bf16 %v3025_v61, %v3025_v61  ;;  %v3028_v3 = vcombine.high %v3018_v16, %v5717_v0 }
 0xe9e   : > { %v3031_v44 = vpack.c.bf16 %v3026_v43, %v3026_v43  ;;  %v3029_v34 = vcombine.high %v3025_v61, %v5717_v0 }
 0xe9f   : > { %v3033_v63 = vpack.c.bf16 %v3027_v59, %v3027_v59  ;;  %v3035_v4 = vpack.c.bf16 %v3028_v3, %v3028_v3 }
 0xea0   : > { %v3037_v1 = vpack.c.bf16 %v3029_v34, %v3029_v34 }
 0xea3   : > { %5426 = vmatmul.mubr.msk.bf16.vlgmr.msra.gmra.mrb[44].mxu1 %vm1238_vm2, %v3099_v5 }
 0xea4   : > { %5437 = vmatprep.mubr.msk.bf16.mxu1 %vm5718_vm0, %v5717_v0 }
 0xf5e   : > { %v3558_v23 = vpop.f32.mrb[32].mxu1 }
 0xf5f   : > { %v3559_v25 = vadd.f32 %v5648_v56, %v3558_v23  ;;  %v5409_v24 = vpop.f32.mrb[33].mxu1 }
 0xf60   : > { %v3561_v62 = vpop.f32.mrb[34].mxu1 }
 0xf61   : > { %v5410_v7 = vpop.f32.mrb[35].mxu1  ;;  %v6402_v11 = vadd.f32 %v5649_v10, %v3559_v25 }
 0xf63   : > { %v3706_v8 = vsel %vm1238_vm2, %v6402_v11, -inf }
 0xf64   : > { %3707 = vmax.xlane.f32.xlu0 %v3706_v8 }
 0xf66   : > { %v3604_v13 = vpop.f32.mrb[36].mxu1 }
 0xf67   : > { %v3605_v6 = vadd.f32 %v5650_v14, %v3604_v13  ;;  %v5415_v19 = vpop.f32.mrb[37].mxu1 }
 0xf68   : > { %v3607_v9 = vpop.f32.mrb[38].mxu1 }
 0xf69   : > { %v5416_v18 = vpop.f32.mrb[39].mxu1  ;;  %v6409_v20 = vadd.f32 %v5649_v10, %v3605_v6 }
 0xf6b   : > { %v3709_v21 = vsel %vm1238_vm2, %v6409_v20, -inf }
 0xf6c   : > { %3710 = vmax.xlane.f32.xlu1 %v3709_v21 }
 0xf6e   : > { %v3650_v22 = vpop.f32.mrb[40].mxu1 }
 0xf6f   : > { %v5421_v27 = vpop.f32.mrb[41].mxu1  ;;  %v3651_v48 = vadd.f32 %v5651_v46, %v3650_v22 }
 0xf70   : > { %v3653_v28 = vpop.f32.mrb[42].mxu1 }
 0xf71   : > { %v5422_v29 = vpop.f32.mrb[43].mxu1  ;;  %v6422_v45 = vadd.f32 %v5649_v10, %v3651_v48 }
 0xf73   : > { %v3712_v52 = vsel %vm1238_vm2, %v6422_v45, -inf }
 0xf76   : > { %v3696_v30 = vpop.f32.mrb[44].mxu1 }
 0xf77   : > { %v5427_v31 = vpop.f32.mrb[45].mxu1  ;;  %v3697_v51 = vadd.f32 %v5652_v49, %v3696_v30 }
 0xf78   : > { %v3699_v32 = vpop.f32.mrb[46].mxu1 }
 0xf79   : > { %v5428_v33 = vpop.f32.mrb[47].mxu1  ;;  %v6429_v53 = vadd.f32 %v5649_v10, %v3697_v51 }
 0xf7b   : > { %v3715_v54 = vsel %vm1238_vm2, %v6429_v53, -inf }
 0xf91   : > { %3770 = vxpose.xlu0.c.b16.start.end [1/1] (short) (narrow) %v3031_v44, 16 }
 0xf99   : > { %3754 = vxpose.xlu1.c.b16.start.end [1/1] (short) (narrow) %v3030_v50, 16 }
 0xf9e   : > { %3713 = vmax.xlane.f32.xlu0 %v3712_v52 }
 0xfa6   : > { %3716 = vmax.xlane.f32.xlu1 %v3715_v54 }
 0xfcb   : > { %3786 = vxpose.xlu0.c.b16.start.end [1/1] (short) (narrow) %v3032_v58, 16 }
 0xfcf   : > { %3818 = vxpose.xlu0.c.b16.start.end [1/1] (short) (narrow) %v3034_v17, 16 }
 0xfd3   : > { %3802 = vxpose.xlu1.c.b16.start.end [1/1] (short) (narrow) %v3033_v63, 16  ;;  %3850 = vxpose.xlu0.c.b16.start.end [1/1] (short) (narrow) %v3036_v2, 16 }
 0xfd7   : > { %3834 = vxpose.xlu1.c.b16.start.end [1/1] (short) (narrow) %v3035_v4, 16 }
 0xfdb   : > { %3866 = vxpose.xlu1.c.b16.start.end [1/1] (short) (narrow) %v3037_v1, 16 }
 0xff1   : > { %v3708_v5 = vpop.xlane.xlu0 %3707 }
 0xff2   : > { %v3718_v41 = vsub.f32 %v6402_v11, %v3708_v5 }
 0xff4   : > { %v3722_v51 = vmul.f32 1.442695, %v3718_v41 }
 0xff6   : > { %5627 = vpow2.f32 %v3722_v51 }
 0xff7   : > { %v3778_v23 = vpop.trf.xlu0 }
 0xff9   : > { %v3711_v56 = vpop.xlane.xlu1 %3710 }
 0xffa   : > { %v3719_v46 = vsub.f32 %v6409_v20, %v3711_v56 }
 0xffc   : > { %v3724_v57 = vmul.f32 1.442695, %v3719_v46 }
 0xffe   : > { %5629 = vpow2.f32 %v3724_v57 }
 0xfff   : > { %v3762_v24 = vpop.trf.xlu1 }
0x1000   : > { %v5628_v61 = vpop.eup %5627 }
0x1001   : > { %v3730_v63 = vsel %vm1238_vm2, %v5628_v61, 0.0 }
0x102b   : > { %v3714_v25 = vpop.xlane.xlu0 %3713 }
0x102c   : > { %v3720_v52 = vsub.f32 %v6422_v45, %v3714_v25  ;;  %v5630_v45 = vpop.eup %5629 }
0x102e   : > { %v3726_v17 = vmul.f32 1.442695, %v3720_v52 }
0x1030   : > { %5631 = vpow2.f32 %v3726_v17 }
0x1031   : > { %v3794_v12 = vpop.trf.xlu0 }
0x1033   : > { %v3717_v15 = vpop.xlane.xlu1 %3716 }
0x1034   : > { %v3721_v11 = vsub.f32 %v6429_v53, %v3717_v15  ;;  %v3733_v53 = vsel %vm1238_vm2, %v5630_v45, 0.0 }
0x1035   : > { %v3826_v26 = vpop.trf.xlu0 }
0x1036   : > { %v3882_v8 = vcombine.low %v3762_v24, %v3826_v26  ;;  %v3728_v59 = vmul.f32 1.442695, %v3721_v11 }
0x1038   : > { %v3889_v6 = vrot.slane %v3882_v8, %v5910_v39  ;;  %5633 = vpow2.f32 %v3728_v59 }
0x1039   : > { %v3810_v62 = vpop.trf.xlu1  ;;  %v3858_v7 = vpop.trf.xlu0 }
0x103a   : > { %v3890_v10 = vcombine.low %v3794_v12, %v3858_v7  ;;  %v5632_v2 = vpop.eup %5631 }
0x103b   : > { %v3736_v4 = vsel %vm1238_vm2, %v5632_v2, 0.0 }
0x103c   : > { %v3897_v13 = vrot.slane %v3890_v10, %v5910_v39 }
0x103d   : > { %v3842_v14 = vpop.trf.xlu1 }
0x103e   : > { %v3916_v19 = vcombine.low %v3778_v23, %v3842_v14  ;;  %v3898_v9 = vcombine.low %v3889_v6, %v3897_v13  ;;  %v3899_v32 = vcombine.high %v3889_v6, %v3897_v13 }
0x1040   : > { %v3923_v22 = vrot.slane %v3916_v19, %v5910_v39  ;;  %v3906_v28 = vrot.slane %v3898_v9, %v5916_v47  ;;  %v3913_v48 = vrot.slane %v3899_v32, %v5916_v47 }
0x1041   : > { %v3874_v18 = vpop.trf.xlu1 }
0x1042   : > { %v3924_v21 = vcombine.low %v3810_v62, %v3874_v18  ;;  %v3954_v33 = vshrl.u32 %v3906_v28, 16  ;;  %v3914_v37 = vcombine.high %v3906_v28, %v5725_v40  ;;  %v3970_v16 = vshrl.u32 %v3913_v48, 16  ;;  %v5634_v3 = vpop.eup %5633 }
0x1043   : > { %v3739_v34 = vsel %vm1238_vm2, %v5634_v3, 0.0  ;;  %v3915_v5 = vcombine.high %v3913_v48, %v5725_v40 }
0x1044   : > { %v3931_v27 = vrot.slane %v3924_v21, %v5910_v39  ;;  %v3962_v49 = vshrl.u32 %v3914_v37, 16 }
0x1045   : > { %v3978_v25 = vshrl.u32 %v3915_v5, 16 }
0x1046   : > { %v3932_v29 = vcombine.low %v3923_v22, %v3931_v27  ;;  %v3933_v30 = vcombine.high %v3923_v22, %v3931_v27 }
0x1048   : > { %v3940_v31 = vrot.slane %v3932_v29, %v5916_v47  ;;  %v3947_v42 = vrot.slane %v3933_v30, %v5916_v47 }
0x104a   : > { %v3952_v35 = vpack.i.b16 %v3940_v31, %v3906_v28  ;;  %v3955_v36 = vshrl.u32 %v3940_v31, 16  ;;  %v3948_v38 = vcombine.high %v3940_v31, %v5725_v40  ;;  %v3971_v55 = vshrl.u32 %v3947_v42, 16 }
0x104b   : > { %v3968_v58 = vpack.i.b16 %v3947_v42, %v3913_v48  ;;  %v3949_v1 = vcombine.high %v3947_v42, %v5725_v40 }
0x104c   : > { %3982 = vxpose.xlu0.c.b16.start.end [1/1] (short) (narrow) %v3952_v35, 16  ;;  %v3956_v43 = vpack.i.b16 %v3955_v36, %v3954_v33  ;;  %v3963_v44 = vshrl.u32 %v3948_v38, 16  ;;  %v3960_v50 = vpack.i.b16 %v3948_v38, %v3914_v37  ;;  %v3972_v20 = vpack.i.b16 %v3971_v55, %v3970_v16 }
0x104d   : > { %v3979_v23 = vshrl.u32 %v3949_v1, 16  ;;  %v3976_v56 = vpack.i.b16 %v3949_v1, %v3915_v5 }
0x104e   : > { %3998 = vxpose.xlu1.c.b16.start.end [1/1] (short) (narrow) %v3956_v43, 16  ;;  %v3964_v54 = vpack.i.b16 %v3963_v44, %v3962_v49 }
0x104f   : > { %v3980_v24 = vpack.i.b16 %v3979_v23, %v3978_v25 }
0x1050   : > { %4014 = vxpose.xlu0.c.b16.start.end [1/1] (short) (narrow) %v3960_v50, 16 }
0x1052   : > { %4030 = vxpose.xlu1.c.b16.start.end [1/1] (short) (narrow) %v3964_v54, 16 }
0x1054   : > { %4046 = vxpose.xlu0.c.b16.start.end [1/1] (short) (narrow) %v3968_v58, 16 }
0x1056   : > { %4062 = vxpose.xlu1.c.b16.start.end [1/1] (short) (narrow) %v3972_v20, 16 }
0x1061   : > { %3731 = vadd.xlane.f32.xlu0 %v3730_v63 }
0x1063   : > { %3734 = vadd.xlane.f32.xlu1 %v3733_v53 }
0x1065   : > { %3737 = vadd.xlane.f32.xlu0 %v3736_v4 }
0x1067   : > { %3740 = vadd.xlane.f32.xlu1 %v3739_v34 }
0x1092   : > { %4078 = vxpose.xlu0.c.b16.start.end [1/1] (short) (narrow) %v3976_v56, 16 }
0x1094   : > { %4094 = vxpose.xlu1.c.b16.start.end [1/1] (short) (narrow) %v3980_v24, 16 }
0x10b2   : > { %v3990_v12 = vpop.trf.xlu0 }
0x10b4   : > { %v4006_v15 = vpop.trf.xlu1 }
0x10b6   : > { %v4022_v26 = vpop.trf.xlu0 }
0x10b8   : > { %v4038_v62 = vpop.trf.xlu1 }
0x10ba   : > { %v4054_v7 = vpop.trf.xlu0 }
0x10bb   : > { %v4110_v19 = vcombine.low %v3990_v12, %v4054_v7 }
0x10bc   : > { %v4070_v10 = vpop.trf.xlu1 }
0x10bd   : > { %v4135_v21 = vcombine.low %v4006_v15, %v4070_v10  ;;  %v4117_v30 = vrot.slane %v4110_v19, %v5910_v39 }
0x10bf   : > { %v4142_v37 = vrot.slane %v4135_v21, %v5910_v39 }
0x10ee   : > { %v3732_v8 = vpop.xlane.xlu0 %3731 }
0x10ef   : > { %5635 = vrcp.f32 %v3732_v8 }
0x10f0   : > { %v3735_v13 = vpop.xlane.xlu1 %3734 }
0x10f1   : > { %5637 = vrcp.f32 %v3735_v13 }
0x10f2   : > { %v3738_v14 = vpop.xlane.xlu0 %3737 }
0x10f3   : > { %5639 = vrcp.f32 %v3738_v14 }
0x10f4   : > { %v3741_v6 = vpop.xlane.xlu1 %3740 }
0x10f5   : > { %5641 = vrcp.f32 %v3741_v6 }
0x10f8   : > { %v4086_v9 = vpop.trf.xlu0 }
0x10f9   : > { %v5636_v18 = vpop.eup %5635  ;;  %v4118_v22 = vcombine.low %v4022_v26, %v4086_v9 }
0x10fa   : > { %v4102_v27 = vpop.trf.xlu1  ;;  %v3746_v28 = vmul.f32 %v5636_v18, %v5628_v61 }
0x10fb   : > { %v5638_v29 = vpop.eup %5637  ;;  %v4125_v31 = vrot.slane %v4118_v22, %v5910_v39  ;;  %v4143_v32 = vcombine.low %v4038_v62, %v4102_v27 }
0x10fc   : > { %v3750_v33 = vpack.c.bf16 %v3746_v28, %v3746_v28  ;;  %v3747_v35 = vmul.f32 %v5638_v29, %v5630_v45 }
0x10fd   : > { %v5640_v36 = vpop.eup %5639  ;;  %v4126_v38 = vcombine.low %v4117_v30, %v4125_v31  ;;  %v4150_v41 = vrot.slane %v4143_v32, %v5910_v39 }
0x10fe   : > { %v4176_v42 = vsel %vm1238_vm2, %v3750_v33, 0  ;;  %v3751_v43 = vpack.c.bf16 %v3747_v35, %v3747_v35  ;;  %v3748_v44 = vmul.f32 %v5640_v36, %v5632_v2  ;;  %v5587_v35 = vld [vmem:[%s6647_s5 + $0x10] sm:$0xff]  }
0x10ff   : > { %v5642_v46 = vpop.eup %5641  ;;  %v4133_v48 = vrot.slane %v4126_v38, %v5916_v47  ;;  %v4151_v50 = vcombine.low %v4142_v37, %v4150_v41  ;;  %5430 = vmatpush3.bf16.xpose.msra.mxu0 %v4176_v42 }
0x1100   : > { %v4222_v49 = vsel %vm1238_vm2, %v3751_v43, 0  ;;  %5441 = vmatprep.subr.bf16.mxu0 %v5717_v0  ;;  %v3749_v51 = vmul.f32 %v5642_v46, %v5634_v3  ;;  %v3752_v54 = vpack.c.bf16 %v3748_v44, %v3748_v44 }
0x1101   : > { %v4158_v52 = vrot.slane %v4151_v50, %v5916_v47  ;;  %5436 = vmatpush3.bf16.xpose.msra.mxu1 %v4222_v49  ;;  %v4163_v55 = vshrl.u32 %v4133_v48, 16  ;;  %v4134_v59 = vcombine.high %v4133_v48, %v5725_v40 }
0x1102   : > { %5447 = vmatprep.subr.bf16.mxu1 %v5717_v0  ;;  %v3753_v58 = vpack.c.bf16 %v3749_v51, %v3749_v51  ;;  %v4268_v20 = vsel %vm1238_vm2, %v3752_v54, 0 }
0x1103   : > { %v4162_v57 = vpack.i.b16 %v4158_v52, %v4133_v48  ;;  %v4164_v11 = vshrl.u32 %v4158_v52, 16  ;;  %v4159_v17 = vcombine.high %v4158_v52, %v5725_v40  ;;  %v4169_v63 = vshrl.u32 %v4134_v59, 16  ;;  %v5588_v48 = vld [vmem:[%s6647_s5 + $0x18] sm:$0xff]  }
0x1104   : > { %v4314_v61 = vsel %vm1238_vm2, %v3753_v58, 0 }
0x1105   : > { %v4165_v16 = vpack.i.b16 %v4164_v11, %v4163_v55  ;;  %v4170_v45 = vshrl.u32 %v4159_v17, 16  ;;  %v4168_v2 = vpack.i.b16 %v4159_v17, %v4134_v59 }
0x1106   : > { %5432 = vmatmul.mubr.msk.bf16.vlgmr.msra.gmra.mrb[20].mxu0 %vm1238_vm2, %v4162_v57 }
0x1107   : > { %5442 = vmatpush3.bf16.xpose.msra.mxu0 %v4268_v20  ;;  %5443 = vmatprep.mubr.msk.bf16.mxu0 %vm5718_vm0, %v5717_v0  ;;  %v4171_v53 = vpack.i.b16 %v4170_v45, %v4169_v63 }
0x1108   : > { %5438 = vmatmul.mubr.msk.bf16.vlgmr.msra.gmra.mrb[48].mxu1 %vm1238_vm2, %v4165_v16  ;;  %5453 = vmatprep.subr.bf16.mxu0 %v5717_v0 }
0x1109   : > { %5448 = vmatpush3.bf16.xpose.msra.mxu1 %v4314_v61  ;;  %5449 = vmatprep.mubr.msk.bf16.mxu1 %vm5718_vm0, %v5717_v0 }
0x110a   : > { %5461 = vmatprep.subr.bf16.mxu1 %v5717_v0 }
0x110e   : > { %5444 = vmatmul.mubr.msk.bf16.vlgmr.msra.gmra.mrb[24].mxu0 %vm1238_vm2, %v4168_v2 }
0x110f   : > { %5457 = vmatprep.mubr.msk.bf16.mxu0 %vm5718_vm0, %v5717_v0  ;;  %5454 = vmatpush3.bf16.msra.mxu0 %v5587_v35 }
0x1110   : > { %5450 = vmatmul.mubr.msk.bf16.vlgmr.msra.gmra.mrb[52].mxu1 %vm1238_vm2, %v4171_v53  ;;  %5455 = vmatprep.subr.bf16.mxu0 %v5717_v0 }
0x1111   : > { %5477 = vmatprep.mubr.msk.bf16.mxu1 %vm5718_vm0, %v5717_v0 }
0x1113   : > { %5456 = vmatpush3.bf16.msra.mxu0 %v5588_v48 }
0x1114   : > { %5481 = vmatprep.subr.bf16.mxu0 %v5717_v0 }
0x11d9   : > { %v4212_v40 = vpop.f32.mrb[20].mxu0 }
0x11da   : > { %4356 = vxpose.xlu0.b32.start.end [1/1] (short) (narrow) %v4212_v40, 8  ;;  %v5433_v3 = vpop.f32.mrb[21].mxu0 }
0x11db   : > { %v4215_v4 = vpop.f32.mrb[22].mxu0  ;;  %v4258_v34 = vpop.f32.mrb[48].mxu1 }
0x11dc   : > { %4388 = vxpose.xlu1.b32.start.end [1/1] (short) (narrow) %v4258_v34, 8  ;;  %v5434_v1 = vpop.f32.mrb[23].mxu0  ;;  %v5439_v5 = vpop.f32.mrb[49].mxu1  ;;  %v5589_v34 = vld [vmem:[%s6649_s7 + $0x40] sm:$0xff]  }
0x11dd   : > { %v4261_v23 = vpop.f32.mrb[50].mxu1  ;;  %5462 = vmatpush3.bf16.msra.mxu1 %v5589_v34  ;;  %v5590_v1 = vld [vmem:[%s6649_s7 + $0x48] sm:$0xff]   ;;  %v5591_v5 = vld [vmem:[%s6649_s7 + $0x50] sm:$0xff]  }
0x11de   : > { %v5440_v56 = vpop.f32.mrb[51].mxu1  ;;  %5463 = vmatprep.subr.bf16.mxu1 %v5717_v0 }
0x11e1   : > { %v4304_v25 = vpop.f32.mrb[24].mxu0  ;;  %5464 = vmatpush3.bf16.msra.mxu1 %v5590_v1 }
0x11e2   : > { %4420 = vxpose.xlu0.b32.start.end [1/1] (short) (narrow) %v4304_v25, 8  ;;  %v5445_v24 = vpop.f32.mrb[25].mxu0  ;;  %5465 = vmatprep.subr.bf16.mxu1 %v5717_v0 }
0x11e3   : > { %v4307_v12 = vpop.f32.mrb[26].mxu0  ;;  %v4350_v15 = vpop.f32.mrb[52].mxu1 }
0x11e4   : > { %v5446_v26 = vpop.f32.mrb[27].mxu0  ;;  %v5451_v62 = vpop.f32.mrb[53].mxu1 }
0x11e5   : > { %v4353_v7 = vpop.f32.mrb[54].mxu1  ;;  %5466 = vmatpush3.bf16.msra.mxu1 %v5591_v5  ;;  %v5592_v26 = vld [vmem:[%s6649_s7 + $0x58] sm:$0xff]   ;;  %v5593_v62 = vld [vmem:[%s6649_s7 + $0x60] sm:$0xff]  }
0x11e6   : > { %v5452_v10 = vpop.f32.mrb[55].mxu1  ;;  %4452 = vxpose.xlu0.b32.start.end [1/1] (short) (narrow) %v4350_v15, 8  ;;  %5467 = vmatprep.subr.bf16.mxu1 %v5717_v0  ;;  %v5595_v7 = vld [vmem:[%s6649_s7 + $0x70] sm:$0xff]  }
0x11e7   : > { %v5596_v10 = vld [vmem:[%s6649_s7 + $0x78] sm:$0xff]  }
0x11e9   : > { %5468 = vmatpush3.bf16.msra.mxu1 %v5592_v26 }
0x11ea   : > { %5469 = vmatprep.subr.bf16.mxu1 %v5717_v0 }
0x11ed   : > { %5470 = vmatpush3.bf16.msra.mxu1 %v5593_v62 }
0x11ee   : > { %5471 = vmatprep.subr.bf16.mxu1 %v5717_v0 }
0x125a   : > { %v4372_v8 = vpop.trf.xlu0 }
0x125c   : > { %v4404_v14 = vpop.trf.xlu1 }
0x1262   : > { %v4436_v13 = vpop.trf.xlu0 }
0x1263   : > { %v4484_v6 = vcombine.low %v4372_v8, %v4436_v13  ;;  %v4485_v19 = vcombine.high %v4372_v8, %v4436_v13  ;;  %v5597_v8 = vld [vmem:[%s6650_s8 + $0x40] sm:$0xff]   ;;  %v5598_v13 = vld [vmem:[%s6650_s8 + $0x48] sm:$0xff]  }
0x1265   : > { %v4492_v22 = vrot.slane %v4484_v6, %v5910_v39  ;;  %v4499_v27 = vrot.slane %v4485_v19, %v5910_v39  ;;  %v5600_v6 = vld [vmem:[%s6650_s8 + $0x58] sm:$0xff]   ;;  %v5601_v19 = vld [vmem:[%s6650_s8 + $0x60] sm:$0xff]  }
0x1266   : > { %v4468_v9 = vpop.trf.xlu0 }
0x1267   : > { %v4500_v18 = vcombine.low %v4404_v14, %v4468_v9  ;;  %v4501_v21 = vcombine.high %v4404_v14, %v4468_v9  ;;  %v5599_v14 = vld [vmem:[%s6650_s8 + $0x50] sm:$0xff]   ;;  %v5602_v9 = vld [vmem:[%s6650_s8 + $0x68] sm:$0xff]  }
0x1269   : > { %v4508_v28 = vrot.slane %v4500_v18, %v5910_v39  ;;  %v4515_v29 = vrot.slane %v4501_v21, %v5910_v39  ;;  %v5603_v18 = vld [vmem:[%s6650_s8 + $0x70] sm:$0xff]  }
0x126b   : > { %v4516_v30 = vcombine.low %v4492_v22, %v4508_v28  ;;  %v4517_v31 = vcombine.high %v4492_v22, %v4508_v28  ;;  %v4532_v32 = vcombine.low %v4499_v27, %v4515_v29  ;;  %v4533_v33 = vcombine.high %v4499_v27, %v4515_v29  ;;  %v5123_v29 = vld [vmem:[%s6648_s6 + $0x1] ss:$0 sm:$0xff] }
0x126d   : > { %v4524_v36 = vrot.slane %v4516_v30, %v5916_v47  ;;  %v4531_v37 = vrot.slane %v4517_v31, %v5916_v47  ;;  %v4540_v38 = vrot.slane %v4532_v32, %v5916_v47  ;;  %v4547_v41 = vrot.slane %v4533_v33, %v5916_v47  ;;  %v5604_v33 = vld [vmem:[%s6650_s8 + $0x78] sm:$0xff]  }
0x126f   : > { %v4552_v42 = vcombine.low %v4524_v36, %v4531_v37  ;;  %v5113_v43 = vcombine.high %v4524_v36, %v4531_v37  ;;  %v4568_v44 = vcombine.low %v4540_v38, %v4547_v41  ;;  %v5114_v46 = vcombine.high %v4540_v38, %v4547_v41 }
0x1271   : > { %v4559_v50 = vrot.slane %v4552_v42, %v5910_v39  ;;  %v4567_v49 = vrot.slane %v5113_v43, %v5910_v39  ;;  %v4575_v51 = vrot.slane %v4568_v44, %v5910_v39  ;;  %v4583_v52 = vrot.slane %v5114_v46, %v5910_v39 }
0x1273   : > { %v4585_v54 = vcombine.high %v4559_v50, %v4567_v49  ;;  %v4601_v55 = vcombine.high %v4575_v51, %v4583_v52  ;;  %v4584_v57 = vcombine.low %v4559_v50, %v4567_v49  ;;  %v4600_v11 = vcombine.low %v4575_v51, %v4583_v52 }
0x1275   : > { %v4599_v58 = vrot.slane %v4585_v54, %v5916_v47  ;;  %v4615_v16 = vrot.slane %v4601_v55, %v5916_v47  ;;  %v4592_v17 = vrot.slane %v4584_v57, %v5916_v47  ;;  %v4608_v20 = vrot.slane %v4600_v11, %v5916_v47  ;;  %v5172_v55 = vld [vmem:[%s6651_s9] ss:$0 sm:$0xff] }
0x1277   : > { %v4618_v59 = vcombine.low %v4599_v58, %v4615_v16  ;;  %v4617_v61 = vcombine.high %v4592_v17, %v4608_v20  ;;  %v4616_v45 = vcombine.low %v4592_v17, %v4608_v20  ;;  %v4619_v39 = vcombine.high %v4599_v58, %v4615_v16 }
0x1279   : > { %4625 = vrot.lane.b32.xlu1 %v4618_v59, %s6668_s27  ;;  %4621 = vrot.lane.b32.xlu0 %v4617_v61, %s6669_s20 }
0x127d   : > { %4629 = vrot.lane.b32.xlu1 %v4619_v39, %s6670_s12  ;;  %s6600_s12 = scalar_lea.hbm %s6652_s10, %s5174_s28 }
0x12eb   : > { %v4626_v63 = vpop.permute.xlu1 %4625  ;;  %v4622_v2 = vpop.permute.xlu0 %4621 }
0x12ec   : > { %v4632_v53 = vsel %vm1238_vm2, %v4616_v45, %v4622_v2 }
0x12ed   : > { %v4633_v3 = vsel %vm2361_vm3, %v4632_v53, %v4626_v63 }
0x12ef   : > { %v4630_v40 = vpop.permute.xlu1 %4629 }
0x12f0   : > { %v4634_v4 = vsel %vm2363_vm4, %v4633_v3, %v4630_v40 }
0x12f1   : > { %v4635_v47 = vpack.c.bf16 %v4634_v4, %v4634_v4 }
0x12f3   : > { %5458 = vmatmul.mubr.msk.bf16.vlgmr.msra.gmra.mrb[28].mxu0 %vm2382_vm5, %v4635_v47 }
0x12f4   : > { %5497 = vmatprep.mubr.msk.bf16.mxu0 %vm5718_vm0, %v5717_v0  ;;  %5482 = vmatpush3.bf16.msra.mxu0 %v5597_v8 }
0x12f5   : > { %5483 = vmatprep.subr.bf16.mxu0 %v5717_v0 }
0x12f8   : > { %5484 = vmatpush3.bf16.msra.mxu0 %v5598_v13 }
0x12f9   : > { %5485 = vmatprep.subr.bf16.mxu0 %v5717_v0 }
0x12fc   : > { %5486 = vmatpush3.bf16.msra.mxu0 %v5599_v14 }
0x12fd   : > { %5487 = vmatprep.subr.bf16.mxu0 %v5717_v0 }
0x1300   : > { %5488 = vmatpush3.bf16.msra.mxu0 %v5600_v6 }
0x1301   : > { %5489 = vmatprep.subr.bf16.mxu0 %v5717_v0 }
0x1304   : > { %5490 = vmatpush3.bf16.msra.mxu0 %v5601_v19 }
0x1305   : > { %5491 = vmatprep.subr.bf16.mxu0 %v5717_v0 }
0x1308   : > { %5492 = vmatpush3.bf16.msra.mxu0 %v5602_v9 }
0x1309   : > { %5493 = vmatprep.subr.bf16.mxu0 %v5717_v0 }
0x130c   : > { %5494 = vmatpush3.bf16.msra.mxu0 %v5603_v18 }
0x130d   : > { %5495 = vmatprep.subr.bf16.mxu0 %v5717_v0 }
0x1310   : > { %5496 = vmatpush3.bf16.msra.mxu0 %v5604_v33 }
0x13c6   : > { %v4690_v23 = vpop.f32.mrb[28].mxu0 }
0x13c7   : > { %v4696_v56 = vadd.f32 %v4690_v23, %v6242_v60  ;;  %v5459_v25 = vpop.f32.mrb[29].mxu0  ;;  %v5594_v60 = vld [vmem:[%s6649_s7 + $0x68] sm:$0xff]  }
0x13c8   : > { %v4693_v24 = vpop.f32.mrb[30].mxu0  ;;  %5472 = vmatpush3.bf16.msra.mxu1 %v5594_v60 }
0x13c9   : > { %v5460_v12 = vpop.f32.mrb[31].mxu0  ;;  %v4697_v15 = vmul.f32 %v4696_v56, %v4696_v56  ;;  %5473 = vmatprep.subr.bf16.mxu1 %v5717_v0 }
0x13cb   : > { %4698 = vadd.xlane.f32.xlu1 %v4697_v15 }
0x13cc   : > { %5474 = vmatpush3.bf16.msra.mxu1 %v5595_v7 }
0x13cd   : > { %5475 = vmatprep.subr.bf16.mxu1 %v5717_v0 }
0x13d0   : > { %5476 = vmatpush3.bf16.msra.mxu1 %v5596_v10 }
0x1458   : > { %v4699_v21 = vpop.xlane.xlu1 %4698 }
0x1459   : > { %v4700_v22 = vmul.f32 0.03125, %v4699_v21 }
0x145b   : > { %v4701_v27 = vadd.f32 1e-06, %v4700_v22 }
0x145d   : > { %5643 = vrsqrt.f32 %v4701_v27 }
0x1467   : > { %v5644_v28 = vpop.eup %5643 }
0x1468   : > { %v4703_v30 = vmul.f32 %v5644_v28, %v4696_v56 }
0x146a   : > { %v4712_v31 = vmul.f32 %v5123_v29, %v4703_v30 }
0x146c   : > { %v4713_v32 = vpack.c.bf16 %v4712_v31, %v4712_v31 }
0x146e   : > { %5478 = vmatmul.mubr.bf16.vlgmr.msra.gmra.mrb[56].mxu1 %v4713_v32 }
0x1541   : > { %v4813_v35 = vpop.f32.mrb[56].mxu1 }
0x1542   : > { %v4819_v0 = vmax.f32 %v4813_v35, 0.0  ;;  %v5479_v36 = vpop.f32.mrb[57].mxu1 }
0x1543   : > { %v4816_v37 = vpop.f32.mrb[58].mxu1 }
0x1544   : > { %v4820_v38 = vpack.c.bf16 %v4819_v0, %v4819_v0  ;;  %v5480_v41 = vpop.f32.mrb[59].mxu1 }
0x1546   : > { %5498 = vmatmul.mubr.bf16.vlgmr.msra.gmra.mrb[32].mxu0 %v4820_v38 }
0x1619   : > { %v4920_v42 = vpop.f32.mrb[32].mxu0 }
0x161a   : > { %v4926_v43 = vadd.f32 %v4920_v42, %v4696_v56  ;;  %v5499_v44 = vpop.f32.mrb[33].mxu0 }
0x161b   : > { %v4923_v46 = vpop.f32.mrb[34].mxu0 }
0x161c   : > { %v4927_v48 = vmul.f32 %v4926_v43, %v4926_v43  ;;  %v5500_v50 = vpop.f32.mrb[35].mxu0 }
0x161e   : > { %4928 = vadd.xlane.f32.xlu0 %v4927_v48 }
0x16ab   : > { %v4929_v49 = vpop.xlane.xlu0 %4928 }
0x16ac   : > { %v4930_v51 = vmul.f32 0.03125, %v4929_v49 }
0x16ae   : > { %v4931_v52 = vadd.f32 1e-06, %v4930_v51 }
0x16b0   : > { %5645 = vrsqrt.f32 %v4931_v52 }
0x16ba   : > { %v5646_v54 = vpop.eup %5645 }
0x16bb   : > { %v4933_v57 = vmul.f32 %v5646_v54, %v4926_v43 }
0x16bd   : > { %v4941_v11 = vmul.f32 %v5172_v55, %v4933_v57 }
0x16bf   : > { %4942 = vst [vmem:[%s361_s29] sm:$0xff] %v4941_v11 }
0x16c0   : > { %5666 = shalt.err (!%p5663_p3)
}
0x16c1   : > { %s5667_s21 = scalar_lea.hbm %s6600_s12, 128  ;;  %s5671_s29 = scalar_lea.hbm %s6652_s10, 256 }
0x16c2   : > { %p5668_p4 = scmp.ne.s32.totalorder %s6600_s12, %s5667_s21  ;;  %p5672_p9 = scmp.lt.u32.totalorder %s6600_s12, %s6652_s10 }
0x16c3   : > { %p5673_p10 = scmp.lt.u32.totalorder %s5671_s29, %s5667_s21  ;;  %p5675_p12 = scmp.lt.u32.totalorder %s5667_s21, %s6600_s12 }
0x16c4   : > { %p5669_p7 = pnand %p5668_p4, %p5824_p5 }
0x16c5   : > { %p5674_p11 = por %p5673_p10, %p5672_p9 }
0x16c6   : > { %p5670_p8 = pneg %p5669_p7 }
0x16c7   : > { %p5676_p13 = por %p5675_p12, %p5674_p11 }
0x16c9   : > { %p5677_p0 = pnand %p5676_p13, %p5670_p8 }
0x16cb   : > { %5680 = shalt.err (!%p5677_p0)
}
0x16cc   : > { %5501 = dma.vmem_to_hbm [thread:$0]  (%p5824_p5), %s6602_s30, 128, %s6600_s12, %s4944_s26  }
0x16cd PF: > { %p5507_p1 = scmp.ge.s32.totalorder %s5715_s16, 2  ;;  %s4969_s0 = sand.u32 1, %s5703_s13  }
0x16ce   : > { %s4970_s17 = scalar_lea.sflag [#allocation3], %s4969_s0 }
0x16cf   : > { %p5504_p2 = pnand %p5507_p1, %p5828_p6 }
0x16d1   : > { %5698 = dma.done.wait (!%p5504_p2), %s4970_s17, 128  }
0x16d2   : > { %5700 = vsyncadd (!%p5504_p2), %s4970_s17, 4294967168  ;;  %p20_p3 = scmp.ge.s32.totalorder %s5811_s19, 4   ;;  %s6671_s13 = smov %s5707_s14 }
0x16d3   : > { %s6672_s14 = smov %s5711_s15  ;;  %s6673_s15 = smov %s5822_s22 }
0x16d4   : > { %s6674_s16 = smov %s5811_s19  ;;  %22 = sbr.rel (!%p20_p3) target bundleno = 5 (0x5), region = 104 }
0x16db   :  { %4975 = vsyncpa [#allocation3], 1 }
0x16dc   :  { %4977 = vsyncpa [#allocation3 + $0x1], 1 }

</bundles_post_ra>
